<compile_context>
chip_gen: v7x
topology: tpu7x:2x2x1
jax: 0.10.0
libtpu: 0.0.40
codegen_flags: <defaults>
</compile_context>

<pallas_src>
import jax
import jax.numpy as jnp
from jax import lax
from jax.experimental import pallas as pl
from jax.experimental.pallas import tpu as pltpu

PAD_IDX = 0  # Vocab.PAD_IDX


def _round_up(x, m):
    return (x + m - 1) // m * m


def _pick_vmem_limit_bytes():
    """~48 MiB on v7x (64 MiB physical), ~96 MiB on v5e/v6e (128 MiB physical)."""
    try:
        cap = int(pltpu.get_tpu_info().vmem_capacity_bytes)
    except Exception:
        cap = 64 * 1024 * 1024  # conservative (v7x-sized) fallback
    return max(32 * 1024 * 1024, min((cap * 3) // 4, 96 * 1024 * 1024))


def make_text_encoder_kernel(Bp, L, Vp, Hp, Cf, offsets, pad_lo, pad_hi, TB, unroll):
    f32 = jnp.float32
    bf16 = jnp.bfloat16
    H3p = 3 * Hp
    n_vt = Vp // 128

    def kernel(ids_ref, mask_ref, emb_ref, wihT_ref, whhT_ref, bih_ref, bhh_ref,
               wf_ref, bf_ref, out_ref, gi_ref, hid_ref):
        # ---------- bag-of-words: per 128-lane vocab tile, stored lane-dense ----------
        ids = ids_ref[...]                                        # (Bp, L) int32
        for vt in range(n_vt):                                    # static; (Bp,128) live per tile
            col = lax.broadcasted_iota(jnp.int32, (Bp, 128), 1) + vt * 128
            acc = jnp.zeros((Bp, 128), f32)
            for t in range(L):                                    # static compare-add
                acc = acc + (ids[:, t:t + 1] == col).astype(f32)
            if vt == 0:
                acc = jnp.where(col == PAD_IDX, 0.0, acc)
            out_ref[:, vt * 128:(vt + 1) * 128] = acc             # 128-aligned unmasked store

        # ---------- GRU: batched bf16 input projection hoisted out of the recurrence ----------
        gi_ref[...] = (jnp.dot(emb_ref[...], wihT_ref[...],
                               preferred_element_type=f32) + bih_ref[...])   # (L*Bp, 3*Hp) f32

        # zero the 'same'-padding rows of the hidden-state scratch (exact conv padding)
        if pad_lo > 0:
            hid_ref[0:pad_lo * Bp, :] = jnp.zeros((pad_lo * Bp, Hp), f32)
        if pad_hi > 0:
            hid_ref[(L + pad_lo) * Bp:(L + pad_lo + pad_hi) * Bp, :] = (
                jnp.zeros((pad_hi * Bp, Hp), f32))

        b_hh = bhh_ref[...]                                       # (1, 3*Hp) f32

        def step(t, carry):
            h, s = carry
            row = pl.multiple_of(t * Bp, Bp)                      # 8-aligned dynamic row offset
            gi = gi_ref[pl.ds(row, Bp), :]                        # (Bp, 3*Hp), gates 128-aligned
            valid = mask_ref[pl.ds(row, Bp), :]                   # (Bp, 1), precomputed mask
            gh = jnp.dot(h, whhT_ref[...], preferred_element_type=f32) + b_hh
            r = jax.nn.sigmoid(gi[:, 0:Hp] + gh[:, 0:Hp])
            z = jax.nn.sigmoid(gi[:, Hp:2 * Hp] + gh[:, Hp:2 * Hp])
            n = jnp.tanh(gi[:, 2 * Hp:H3p] + r * gh[:, 2 * Hp:H3p])
            h_new = (1.0 - z) * n + z * h
            h_masked = valid * h_new                              # padded steps -> zeros
            row_h = pl.multiple_of(t * Bp + pad_lo * Bp, Bp)
            hid_ref[pl.ds(row_h, Bp), :] = h_masked               # store after the padding rows
            return (h_masked + (1.0 - valid) * h, s + h_masked)

        init = (jnp.zeros((Bp, Hp), f32), jnp.zeros((Bp, Hp), f32))
        _, rnn_sum = lax.fori_loop(0, L, step, init, unroll=unroll)
        out_ref[:, Vp:Vp + Hp] = rnn_sum * (1.0 / L)              # divide by padded length L

        # ---------- fused blocked conv: bf16 taps + bias + ReLU + running time-max ----------
        bias = bf_ref[...]                                        # (1, Cf) f32
        run_max = jnp.zeros((Bp, Cf), f32)                        # ReLU outputs are >= 0
        for t0 in range(0, L, TB):                                # static row-block loop
            tb = min(TB, L - t0)
            rows = tb * Bp
            blk = None
            for oi, o in enumerate(offsets):                      # only statically-nonzero taps
                r0 = (t0 + pad_lo + o) * Bp                       # static, always in-bounds
                x = hid_ref[r0:r0 + rows, :].astype(bf16)
                p = jnp.dot(x, wf_ref[oi], preferred_element_type=f32)
                blk = p if blk is None else blk + p               # first tap: direct assign
            blk = jnp.maximum(blk + bias, 0.0)
            run_max = jnp.maximum(run_max, jnp.max(blk.reshape(tb, Bp, Cf), axis=0))
        out_ref[:, Vp + Hp:Vp + Hp + Cf] = run_max

    return kernel


def text_encoder_pallas(ids, true_lens, params, *, V, H, channels, filters):
    B, L = ids.shape
    E = params["embedding"].shape[1]
    C_total = sum(channels)

    Vp = _round_up(V, 128)
    Hp = _round_up(H, 128)
    Cf = _round_up(C_total, 128)
    H3p = 3 * Hp
    # Sublane-aligned batch; larger B is close to free on the latency-bound recurrence.
    Bp = max(_round_up(B, 8), 8)

    # Covered tap offsets only (skips statically-zero slabs when filter widths differ).
    lefts = [(k - 1) // 2 for k in filters]                       # torch 'same' split
    offsets = tuple(sorted({j - l for k, l in zip(filters, lefts) for j in range(k)}))
    pad_lo = max(0, -min(offsets))
    pad_hi = max(0, max(offsets))
    n_off = len(offsets)

    # ---- glue: layout plumbing only ----
    ids_i = ids.astype(jnp.int32)
    ids_p = jnp.full((Bp, L), PAD_IDX, jnp.int32).at[:B].set(ids_i)

    lens_p = jnp.zeros((Bp,), jnp.int32).at[:B].set(true_lens.astype(jnp.int32))
    mask_flat = ((jnp.arange(L, dtype=jnp.int32)[:, None] < lens_p[None, :])
                 .astype(jnp.float32).reshape(L * Bp, 1))         # (L*Bp, 1) time-major

    emb_tab = params["embedding"].astype(jnp.bfloat16)
    emb_flat = jnp.transpose(emb_tab[ids_p], (1, 0, 2)).reshape(L * Bp, E)   # bf16 (L*Bp, E)

    # Gate-padded GRU weights: each gate (r/z/n) lives at a 128-aligned column offset.
    W_ihT = params["W_ih"].T.astype(jnp.float32)                  # (E, 3H)
    W_hhT = params["W_hh"].T.astype(jnp.float32)                  # (H, 3H)
    W_ihT_p = jnp.zeros((E, H3p), jnp.float32)
    W_hhT_p = jnp.zeros((Hp, H3p), jnp.float32)
    b_ih_p = jnp.zeros((1, H3p), jnp.float32)
    b_hh_p = jnp.zeros((1, H3p), jnp.float32)
    for g in range(3):
        W_ihT_p = W_ihT_p.at[:, g * Hp:g * Hp + H].set(W_ihT[:, g * H:(g + 1) * H])
        W_hhT_p = W_hhT_p.at[:H, g * Hp:g * Hp + H].set(W_hhT[:, g * H:(g + 1) * H])
        b_ih_p = b_ih_p.at[0, g * Hp:g * Hp + H].set(
            params["b_ih"][g * H:(g + 1) * H].astype(jnp.float32))
        b_hh_p = b_hh_p.at[0, g * Hp:g * Hp + H].set(
            params["b_hh"][g * H:(g + 1) * H].astype(jnp.float32))
    W_ihT_p = W_ihT_p.astype(jnp.bfloat16)                        # bf16 MXU operand

    # Fused per-tap conv weights: (n_off, Hp, Cf) bf16, channels packed conv0 | conv1 | ...
    Wf = jnp.zeros((n_off, Hp, Cf), jnp.float32)
    bf = jnp.zeros((1, Cf), jnp.float32)
    colpos = 0
    for (w, b), k, left in zip(params["convs"], filters, lefts):
        C = w.shape[0]
        wt = jnp.transpose(w, (2, 1, 0)).astype(jnp.float32)      # (k, H, C)
        for j in range(k):
            oi = offsets.index(j - left)
            Wf = Wf.at[oi, :H, colpos:colpos + C].set(wt[j])
        bf = bf.at[0, colpos:colpos + C].set(b.astype(jnp.float32))
        colpos += C
    Wf = Wf.astype(jnp.bfloat16)                                  # bf16 MXU operand

    TB = max(1, min(L, 512 // Bp))                                # ~512 hid rows per conv block
    unroll = L if L <= 8 else 8                                   # cap unroll of the recurrence

    kernel = make_text_encoder_kernel(Bp, L, Vp, Hp, Cf, offsets, pad_lo, pad_hi, TB, unroll)
    vmem = pl.BlockSpec(memory_space=pltpu.MemorySpace.VMEM)
    inputs = [ids_p, mask_flat, emb_flat, W_ihT_p, W_hhT_p, b_ih_p, b_hh_p, Wf, bf]

    out = pl.pallas_call(
        kernel,
        out_shape=jax.ShapeDtypeStruct((Bp, Vp + Hp + Cf), jnp.float32),
        in_specs=[vmem] * len(inputs),
        out_specs=vmem,
        scratch_shapes=[
            pltpu.VMEM((L * Bp, H3p), jnp.float32),                       # hoisted gi
            pltpu.VMEM(((L + pad_lo + pad_hi) * Bp, Hp), jnp.float32),    # hiddens + 'same' pad rows
        ],
        compiler_params=pltpu.CompilerParams(vmem_limit_bytes=_pick_vmem_limit_bytes()),
    )(*inputs)

    # Compact the 128-aligned segments back to (B, V + H + C_total).
    return jnp.concatenate(
        [out[:B, :V], out[:B, Vp:Vp + H], out[:B, Vp + Hp:Vp + Hp + C_total]], axis=1)


def text_encoder_reference(ids, true_lens, params, *, V, H, channels, filters):
    """Pure-JAX reference mirroring the PyTorch forward."""
    B, L = ids.shape
    onehot = jax.nn.one_hot(ids, V, dtype=jnp.float32)
    bow = onehot.sum(axis=1).at[:, PAD_IDX].set(0.0)

    emb = params["embedding"][ids]
    W_ih, W_hh = params["W_ih"], params["W_hh"]
    b_ih, b_hh = params["b_ih"], params["b_hh"]

    def step(h, inp):
        x_t, t = inp
        gi = x_t @ W_ih.T + b_ih
        gh = h @ W_hh.T + b_hh
        r = jax.nn.sigmoid(gi[:, :H] + gh[:, :H])
        z = jax.nn.sigmoid(gi[:, H:2 * H] + gh[:, H:2 * H])
        n = jnp.tanh(gi[:, 2 * H:] + r * gh[:, 2 * H:])
        h_new = (1 - z) * n + z * h
        valid = (t < true_lens)[:, None].astype(jnp.float32)
        return valid * h_new + (1 - valid) * h, valid * h_new

    _, hiddens = lax.scan(step, jnp.zeros((B, H), jnp.float32),
                          (jnp.transpose(emb, (1, 0, 2)), jnp.arange(L)))
    rnn_emb = hiddens.sum(axis=0) / L                             # divide by padded length L

    hin = jnp.transpose(hiddens, (1, 2, 0))                       # (B, H, L) == torch NCL
    cnn_embs = []
    for (w, b), k in zip(params["convs"], filters):
        left = (k - 1) // 2
        right = k - 1 - left
        out = lax.conv_general_dilated(hin, w, window_strides=(1,),
                                       padding=[(left, right)],
                                       dimension_numbers=("NCH", "OIH", "NCH"))
        out = jnp.maximum(out + b[None, :, None], 0.0)
        cnn_embs.append(out.max(axis=2))
    return jnp.concatenate([bow, rnn_emb] + cnn_embs, axis=1)


if __name__ == "__main__":
    B, L = 2, 8
    V, E, H = 32, 32, 32          # vocab, word-embedding dim, GRU hidden (unidirectional)
    channels = [16, 16]
    filters = [2, 3]

    key = jax.random.PRNGKey(0)
    keys = jax.random.split(key, 10)

    params = {
        "embedding": jax.random.uniform(keys[0], (V, E), jnp.float32, -0.1, 0.1),
        "W_ih": 0.1 * jax.random.normal(keys[1], (3 * H, E), jnp.float32),
        "W_hh": 0.1 * jax.random.normal(keys[2], (3 * H, H), jnp.float32),
        "b_ih": 0.1 * jax.random.normal(keys[3], (3 * H,), jnp.float32),
        "b_hh": 0.1 * jax.random.normal(keys[4], (3 * H,), jnp.float32),
        "convs": [
            (0.1 * jax.random.normal(keys[5], (channels[0], H, filters[0]), jnp.float32),
             0.1 * jax.random.normal(keys[6], (channels[0],), jnp.float32)),
            (0.1 * jax.random.normal(keys[7], (channels[1], H, filters[1]), jnp.float32),
             0.1 * jax.random.normal(keys[8], (channels[1],), jnp.float32)),
        ],
    }

    true_lens = jnp.array([L, 5], dtype=jnp.int32)                # max length == L (padded batch)
    ids = jax.random.randint(keys[9], (B, L), 1, V, dtype=jnp.int32)
    pos = jnp.arange(L)[None, :]
    ids = jnp.where(pos < true_lens[:, None], ids, PAD_IDX)       # pad positions -> PAD_IDX

    out = text_encoder_pallas(ids, true_lens, params, V=V, H=H,
                              channels=channels, filters=filters)
    out = jax.block_until_ready(out)

    ref = text_encoder_reference(ids, true_lens, params, V=V, H=H,
                                 channels=channels, filters=filters)
    assert out.shape == (B, V + H + sum(channels))
    # bf16 MXU operands (f32 accumulation) -> loosened tolerance vs the f32 reference.
    assert jnp.allclose(out, ref, atol=2e-2, rtol=2e-2), (out, ref)

    print("KERNEL_OK")
</pallas_src>

<mosaic_0001>
module attributes {stable_mosaic.version = 11 : i64} {
  func.func @kernel(%arg0: memref<8x8xi32, #tpu.memory_space<vmem>>, %arg1: memref<64x1xf32, #tpu.memory_space<vmem>>, %arg2: memref<64x32xbf16, #tpu.memory_space<vmem>>, %arg3: memref<32x384xbf16, #tpu.memory_space<vmem>>, %arg4: memref<128x384xf32, #tpu.memory_space<vmem>>, %arg5: memref<1x384xf32, #tpu.memory_space<vmem>>, %arg6: memref<1x384xf32, #tpu.memory_space<vmem>>, %arg7: memref<3x128x128xbf16, #tpu.memory_space<vmem>>, %arg8: memref<1x128xf32, #tpu.memory_space<vmem>>, %arg9: memref<8x384xf32, #tpu.memory_space<vmem>>, %arg10: memref<64x384xf32, #tpu.memory_space<vmem>>, %arg11: memref<80x128xf32, #tpu.memory_space<vmem>>) attributes {dimension_semantics = [], scalar_prefetch = 0 : i64, scratch_operands = 2 : i64, tpu.core_type = #tpu.core_type<tc>} {
    %c0 = arith.constant 0 : index
    %c0_0 = arith.constant 0 : index
    %0 = vector.load %arg0[%c0, %c0_0] : memref<8x8xi32, #tpu.memory_space<vmem>>, vector<8x8xi32>
    %1 = tpu.iota {dimensions = array<i32: 1>} : vector<8x128xi32>
    %c0_i32 = arith.constant 0 : i32
    %2 = vector.broadcast %c0_i32 : i32 to vector<8x128xi32>
    %3 = arith.addi %1, %2 : vector<8x128xi32>
    %cst = arith.constant 0.000000e+00 : f32
    %4 = vector.broadcast %cst : f32 to vector<8x128xf32>
    %5 = vector.extract_strided_slice %0 {offsets = [0, 0], sizes = [8, 1], strides = [1, 1]} : vector<8x8xi32> to vector<8x1xi32>
    %6 = vector.broadcast %5 : vector<8x1xi32> to vector<8x128xi32>
    %7 = arith.cmpi eq, %6, %3 : vector<8x128xi32>
    %8 = arith.extui %7 : vector<8x128xi1> to vector<8x128xi32>
    %9 = arith.sitofp %8 : vector<8x128xi32> to vector<8x128xf32>
    %10 = arith.addf %4, %9 : vector<8x128xf32>
    %11 = vector.extract_strided_slice %0 {offsets = [0, 1], sizes = [8, 1], strides = [1, 1]} : vector<8x8xi32> to vector<8x1xi32>
    %12 = vector.broadcast %11 : vector<8x1xi32> to vector<8x128xi32>
    %13 = arith.cmpi eq, %12, %3 : vector<8x128xi32>
    %14 = arith.extui %13 : vector<8x128xi1> to vector<8x128xi32>
    %15 = arith.sitofp %14 : vector<8x128xi32> to vector<8x128xf32>
    %16 = arith.addf %10, %15 : vector<8x128xf32>
    %17 = vector.extract_strided_slice %0 {offsets = [0, 2], sizes = [8, 1], strides = [1, 1]} : vector<8x8xi32> to vector<8x1xi32>
    %18 = vector.broadcast %17 : vector<8x1xi32> to vector<8x128xi32>
    %19 = arith.cmpi eq, %18, %3 : vector<8x128xi32>
    %20 = arith.extui %19 : vector<8x128xi1> to vector<8x128xi32>
    %21 = arith.sitofp %20 : vector<8x128xi32> to vector<8x128xf32>
    %22 = arith.addf %16, %21 : vector<8x128xf32>
    %23 = vector.extract_strided_slice %0 {offsets = [0, 3], sizes = [8, 1], strides = [1, 1]} : vector<8x8xi32> to vector<8x1xi32>
    %24 = vector.broadcast %23 : vector<8x1xi32> to vector<8x128xi32>
    %25 = arith.cmpi eq, %24, %3 : vector<8x128xi32>
    %26 = arith.extui %25 : vector<8x128xi1> to vector<8x128xi32>
    %27 = arith.sitofp %26 : vector<8x128xi32> to vector<8x128xf32>
    %28 = arith.addf %22, %27 : vector<8x128xf32>
    %29 = vector.extract_strided_slice %0 {offsets = [0, 4], sizes = [8, 1], strides = [1, 1]} : vector<8x8xi32> to vector<8x1xi32>
    %30 = vector.broadcast %29 : vector<8x1xi32> to vector<8x128xi32>
    %31 = arith.cmpi eq, %30, %3 : vector<8x128xi32>
    %32 = arith.extui %31 : vector<8x128xi1> to vector<8x128xi32>
    %33 = arith.sitofp %32 : vector<8x128xi32> to vector<8x128xf32>
    %34 = arith.addf %28, %33 : vector<8x128xf32>
    %35 = vector.extract_strided_slice %0 {offsets = [0, 5], sizes = [8, 1], strides = [1, 1]} : vector<8x8xi32> to vector<8x1xi32>
    %36 = vector.broadcast %35 : vector<8x1xi32> to vector<8x128xi32>
    %37 = arith.cmpi eq, %36, %3 : vector<8x128xi32>
    %38 = arith.extui %37 : vector<8x128xi1> to vector<8x128xi32>
    %39 = arith.sitofp %38 : vector<8x128xi32> to vector<8x128xf32>
    %40 = arith.addf %34, %39 : vector<8x128xf32>
    %41 = vector.extract_strided_slice %0 {offsets = [0, 6], sizes = [8, 1], strides = [1, 1]} : vector<8x8xi32> to vector<8x1xi32>
    %42 = vector.broadcast %41 : vector<8x1xi32> to vector<8x128xi32>
    %43 = arith.cmpi eq, %42, %3 : vector<8x128xi32>
    %44 = arith.extui %43 : vector<8x128xi1> to vector<8x128xi32>
    %45 = arith.sitofp %44 : vector<8x128xi32> to vector<8x128xf32>
    %46 = arith.addf %40, %45 : vector<8x128xf32>
    %47 = vector.extract_strided_slice %0 {offsets = [0, 7], sizes = [8, 1], strides = [1, 1]} : vector<8x8xi32> to vector<8x1xi32>
    %48 = vector.broadcast %47 : vector<8x1xi32> to vector<8x128xi32>
    %49 = arith.cmpi eq, %48, %3 : vector<8x128xi32>
    %50 = arith.extui %49 : vector<8x128xi1> to vector<8x128xi32>
    %51 = arith.sitofp %50 : vector<8x128xi32> to vector<8x128xf32>
    %52 = arith.addf %46, %51 : vector<8x128xf32>
    %c0_i32_1 = arith.constant 0 : i32
    %53 = vector.broadcast %c0_i32_1 : i32 to vector<8x128xi32>
    %54 = arith.cmpi eq, %3, %53 : vector<8x128xi32>
    %cst_2 = arith.constant 0.000000e+00 : f32
    %55 = vector.broadcast %cst_2 : f32 to vector<8x128xf32>
    %56 = arith.select %54, %55, %52 : vector<8x128xi1>, vector<8x128xf32>
    %c0_3 = arith.constant 0 : index
    %c0_4 = arith.constant 0 : index
    %57 = vector.load %arg9[%c0_3, %c0_4] : memref<8x384xf32, #tpu.memory_space<vmem>>, vector<8x128xf32>
    tpu.vector_store %arg9[%c0_3, %c0_4], %56 {strides = array<i32>} : memref<8x384xf32, #tpu.memory_space<vmem>>, vector<8x128xf32>,
    %c0_5 = arith.constant 0 : index
    %c0_6 = arith.constant 0 : index
    %58 = vector.load %arg2[%c0_5, %c0_6] : memref<64x32xbf16, #tpu.memory_space<vmem>>, vector<64x32xbf16>
    %c0_7 = arith.constant 0 : index
    %c0_8 = arith.constant 0 : index
    %59 = vector.load %arg3[%c0_7, %c0_8] : memref<32x384xbf16, #tpu.memory_space<vmem>>, vector<32x384xbf16>
    %cst_9 = arith.constant dense<0.000000e+00> : vector<64x384xf32>
    %60 = tpu.matmul %58, %59, %cst_9 {dimension_numbers = #tpu.dot_dimension_numbers<[1], [0], [0], [1], [0, 0, 1, 1], [], []>} : vector<64x32xbf16>, vector<32x384xbf16>, vector<64x384xf32> -> vector<64x384xf32>
    %c0_10 = arith.constant 0 : index
    %c0_11 = arith.constant 0 : index
    %61 = vector.load %arg5[%c0_10, %c0_11] : memref<1x384xf32, #tpu.memory_space<vmem>>, vector<1x384xf32>
    %62 = vector.broadcast %61 : vector<1x384xf32> to vector<64x384xf32>
    %63 = arith.addf %60, %62 : vector<64x384xf32>
    %c0_12 = arith.constant 0 : index
    %c0_13 = arith.constant 0 : index
    %64 = vector.load %arg10[%c0_12, %c0_13] : memref<64x384xf32, #tpu.memory_space<vmem>>, vector<64x384xf32>
    tpu.vector_store %arg10[%c0_12, %c0_13], %63 {strides = array<i32>} : memref<64x384xf32, #tpu.memory_space<vmem>>, vector<64x384xf32>,
    %cst_14 = arith.constant 0.000000e+00 : f32
    %65 = vector.broadcast %cst_14 : f32 to vector<8x128xf32>
    %c0_15 = arith.constant 0 : index
    %c0_16 = arith.constant 0 : index
    %66 = vector.load %arg11[%c0_15, %c0_16] : memref<80x128xf32, #tpu.memory_space<vmem>>, vector<8x128xf32>
    tpu.vector_store %arg11[%c0_15, %c0_16], %65 {strides = array<i32>} : memref<80x128xf32, #tpu.memory_space<vmem>>, vector<8x128xf32>,
    %cst_17 = arith.constant 0.000000e+00 : f32
    %67 = vector.broadcast %cst_17 : f32 to vector<8x128xf32>
    %c72 = arith.constant 72 : index
    %c0_18 = arith.constant 0 : index
    %68 = vector.load %arg11[%c72, %c0_18] : memref<80x128xf32, #tpu.memory_space<vmem>>, vector<8x128xf32>
    tpu.vector_store %arg11[%c72, %c0_18], %67 {strides = array<i32>} : memref<80x128xf32, #tpu.memory_space<vmem>>, vector<8x128xf32>,
    %c0_19 = arith.constant 0 : index
    %c0_20 = arith.constant 0 : index
    %69 = vector.load %arg6[%c0_19, %c0_20] : memref<1x384xf32, #tpu.memory_space<vmem>>, vector<1x384xf32>
    %cst_21 = arith.constant 0.000000e+00 : f32
    %70 = vector.broadcast %cst_21 : f32 to vector<8x128xf32>
    %cst_22 = arith.constant 0.000000e+00 : f32
    %71 = vector.broadcast %cst_22 : f32 to vector<8x128xf32>
    %c0_i32_23 = arith.constant 0 : i32
    %c8_i32 = arith.constant 8 : i32
    %72 = arith.muli %c0_i32_23, %c8_i32 : i32
    %73 = tpu.assume_multiple %72, 8 : i32
    %74 = arith.index_cast %73 : i32 to index
    %c0_24 = arith.constant 0 : index
    %75 = vector.load %arg10[%74, %c0_24] : memref<64x384xf32, #tpu.memory_space<vmem>>, vector<8x384xf32>
    %76 = arith.index_cast %73 : i32 to index
    %c0_25 = arith.constant 0 : index
    %77 = vector.load %arg1[%76, %c0_25] : memref<64x1xf32, #tpu.memory_space<vmem>>, vector<8x1xf32>
    %c0_26 = arith.constant 0 : index
    %c0_27 = arith.constant 0 : index
    %78 = vector.load %arg4[%c0_26, %c0_27] : memref<128x384xf32, #tpu.memory_space<vmem>>, vector<128x384xf32>
    %cst_28 = arith.constant dense<0.000000e+00> : vector<8x384xf32>
    %79 = tpu.matmul %70, %78, %cst_28 {dimension_numbers = #tpu.dot_dimension_numbers<[1], [0], [0], [1], [0, 0, 1, 1], [], []>} : vector<8x128xf32>, vector<128x384xf32>, vector<8x384xf32> -> vector<8x384xf32>
    %80 = vector.broadcast %69 : vector<1x384xf32> to vector<8x384xf32>
    %81 = arith.addf %79, %80 : vector<8x384xf32>
    %82 = vector.extract_strided_slice %75 {offsets = [0, 0], sizes = [8, 128], strides = [1, 1]} : vector<8x384xf32> to vector<8x128xf32>
    %83 = vector.extract_strided_slice %81 {offsets = [0, 0], sizes = [8, 128], strides = [1, 1]} : vector<8x384xf32> to vector<8x128xf32>
    %84 = arith.addf %82, %83 : vector<8x128xf32>
    %85 = arith.negf %84 : vector<8x128xf32>
    %86 = math.exp %85 : vector<8x128xf32>
    %cst_29 = arith.constant 1.000000e+00 : f32
    %87 = vector.broadcast %cst_29 : f32 to vector<8x128xf32>
    %88 = arith.addf %87, %86 : vector<8x128xf32>
    %89 = arith.divf %87, %88 : vector<8x128xf32>
    %90 = vector.extract_strided_slice %75 {offsets = [0, 128], sizes = [8, 128], strides = [1, 1]} : vector<8x384xf32> to vector<8x128xf32>
    %91 = vector.extract_strided_slice %81 {offsets = [0, 128], sizes = [8, 128], strides = [1, 1]} : vector<8x384xf32> to vector<8x128xf32>
    %92 = arith.addf %90, %91 : vector<8x128xf32>
    %93 = arith.negf %92 : vector<8x128xf32>
    %94 = math.exp %93 : vector<8x128xf32>
    %cst_30 = arith.constant 1.000000e+00 : f32
    %95 = vector.broadcast %cst_30 : f32 to vector<8x128xf32>
    %96 = arith.addf %95, %94 : vector<8x128xf32>
    %97 = arith.divf %95, %96 : vector<8x128xf32>
    %98 = vector.extract_strided_slice %75 {offsets = [0, 256], sizes = [8, 128], strides = [1, 1]} : vector<8x384xf32> to vector<8x128xf32>
    %99 = vector.extract_strided_slice %81 {offsets = [0, 256], sizes = [8, 128], strides = [1, 1]} : vector<8x384xf32> to vector<8x128xf32>
    %100 = arith.mulf %89, %99 : vector<8x128xf32>
    %101 = arith.addf %98, %100 : vector<8x128xf32>
    %102 = math.tanh %101 : vector<8x128xf32>
    %cst_31 = arith.constant 1.000000e+00 : f32
    %103 = vector.broadcast %cst_31 : f32 to vector<8x128xf32>
    %104 = arith.subf %103, %97 : vector<8x128xf32>
    %105 = arith.mulf %104, %102 : vector<8x128xf32>
    %106 = arith.mulf %97, %70 : vector<8x128xf32>
    %107 = arith.addf %105, %106 : vector<8x128xf32>
    %108 = vector.broadcast %77 : vector<8x1xf32> to vector<8x128xf32>
    %109 = arith.mulf %108, %107 : vector<8x128xf32>
    %c8_i32_32 = arith.constant 8 : i32
    %110 = arith.muli %c0_i32_23, %c8_i32_32 : i32
    %c8_i32_33 = arith.constant 8 : i32
    %111 = arith.addi %110, %c8_i32_33 : i32
    %112 = tpu.assume_multiple %111, 8 : i32
    %113 = arith.index_cast %112 : i32 to index
    %c0_34 = arith.constant 0 : index
    %114 = vector.load %arg11[%113, %c0_34] : memref<80x128xf32, #tpu.memory_space<vmem>>, vector<8x128xf32>
    tpu.vector_store %arg11[%113, %c0_34], %109 {strides = array<i32>} : memref<80x128xf32, #tpu.memory_space<vmem>>, vector<8x128xf32>,
    %cst_35 = arith.constant 1.000000e+00 : f32
    %115 = vector.broadcast %cst_35 : f32 to vector<8x1xf32>
    %116 = arith.subf %115, %77 : vector<8x1xf32>
    %117 = vector.broadcast %116 : vector<8x1xf32> to vector<8x128xf32>
    %118 = arith.mulf %117, %70 : vector<8x128xf32>
    %119 = arith.addf %109, %118 : vector<8x128xf32>
    %120 = arith.addf %71, %109 : vector<8x128xf32>
    %c1_i32 = arith.constant 1 : i32
    %c8_i32_36 = arith.constant 8 : i32
    %121 = arith.muli %c1_i32, %c8_i32_36 : i32
    %122 = tpu.assume_multiple %121, 8 : i32
    %123 = arith.index_cast %122 : i32 to index
    %c0_37 = arith.constant 0 : index
    %124 = vector.load %arg10[%123, %c0_37] : memref<64x384xf32, #tpu.memory_space<vmem>>, vector<8x384xf32>
    %125 = arith.index_cast %122 : i32 to index
    %c0_38 = arith.constant 0 : index
    %126 = vector.load %arg1[%125, %c0_38] : memref<64x1xf32, #tpu.memory_space<vmem>>, vector<8x1xf32>
    %c0_39 = arith.constant 0 : index
    %c0_40 = arith.constant 0 : index
    %127 = vector.load %arg4[%c0_39, %c0_40] : memref<128x384xf32, #tpu.memory_space<vmem>>, vector<128x384xf32>
    %cst_41 = arith.constant dense<0.000000e+00> : vector<8x384xf32>
    %128 = tpu.matmul %119, %127, %cst_41 {dimension_numbers = #tpu.dot_dimension_numbers<[1], [0], [0], [1], [0, 0, 1, 1], [], []>} : vector<8x128xf32>, vector<128x384xf32>, vector<8x384xf32> -> vector<8x384xf32>
    %129 = vector.broadcast %69 : vector<1x384xf32> to vector<8x384xf32>
    %130 = arith.addf %128, %129 : vector<8x384xf32>
    %131 = vector.extract_strided_slice %124 {offsets = [0, 0], sizes = [8, 128], strides = [1, 1]} : vector<8x384xf32> to vector<8x128xf32>
    %132 = vector.extract_strided_slice %130 {offsets = [0, 0], sizes = [8, 128], strides = [1, 1]} : vector<8x384xf32> to vector<8x128xf32>
    %133 = arith.addf %131, %132 : vector<8x128xf32>
    %134 = arith.negf %133 : vector<8x128xf32>
    %135 = math.exp %134 : vector<8x128xf32>
    %cst_42 = arith.constant 1.000000e+00 : f32
    %136 = vector.broadcast %cst_42 : f32 to vector<8x128xf32>
    %137 = arith.addf %136, %135 : vector<8x128xf32>
    %138 = arith.divf %136, %137 : vector<8x128xf32>
    %139 = vector.extract_strided_slice %124 {offsets = [0, 128], sizes = [8, 128], strides = [1, 1]} : vector<8x384xf32> to vector<8x128xf32>
    %140 = vector.extract_strided_slice %130 {offsets = [0, 128], sizes = [8, 128], strides = [1, 1]} : vector<8x384xf32> to vector<8x128xf32>
    %141 = arith.addf %139, %140 : vector<8x128xf32>
    %142 = arith.negf %141 : vector<8x128xf32>
    %143 = math.exp %142 : vector<8x128xf32>
    %cst_43 = arith.constant 1.000000e+00 : f32
    %144 = vector.broadcast %cst_43 : f32 to vector<8x128xf32>
    %145 = arith.addf %144, %143 : vector<8x128xf32>
    %146 = arith.divf %144, %145 : vector<8x128xf32>
    %147 = vector.extract_strided_slice %124 {offsets = [0, 256], sizes = [8, 128], strides = [1, 1]} : vector<8x384xf32> to vector<8x128xf32>
    %148 = vector.extract_strided_slice %130 {offsets = [0, 256], sizes = [8, 128], strides = [1, 1]} : vector<8x384xf32> to vector<8x128xf32>
    %149 = arith.mulf %138, %148 : vector<8x128xf32>
    %150 = arith.addf %147, %149 : vector<8x128xf32>
    %151 = math.tanh %150 : vector<8x128xf32>
    %cst_44 = arith.constant 1.000000e+00 : f32
    %152 = vector.broadcast %cst_44 : f32 to vector<8x128xf32>
    %153 = arith.subf %152, %146 : vector<8x128xf32>
    %154 = arith.mulf %153, %151 : vector<8x128xf32>
    %155 = arith.mulf %146, %119 : vector<8x128xf32>
    %156 = arith.addf %154, %155 : vector<8x128xf32>
    %157 = vector.broadcast %126 : vector<8x1xf32> to vector<8x128xf32>
    %158 = arith.mulf %157, %156 : vector<8x128xf32>
    %c8_i32_45 = arith.constant 8 : i32
    %159 = arith.muli %c1_i32, %c8_i32_45 : i32
    %c8_i32_46 = arith.constant 8 : i32
    %160 = arith.addi %159, %c8_i32_46 : i32
    %161 = tpu.assume_multiple %160, 8 : i32
    %162 = arith.index_cast %161 : i32 to index
    %c0_47 = arith.constant 0 : index
    %163 = vector.load %arg11[%162, %c0_47] : memref<80x128xf32, #tpu.memory_space<vmem>>, vector<8x128xf32>
    tpu.vector_store %arg11[%162, %c0_47], %158 {strides = array<i32>} : memref<80x128xf32, #tpu.memory_space<vmem>>, vector<8x128xf32>,
    %cst_48 = arith.constant 1.000000e+00 : f32
    %164 = vector.broadcast %cst_48 : f32 to vector<8x1xf32>
    %165 = arith.subf %164, %126 : vector<8x1xf32>
    %166 = vector.broadcast %165 : vector<8x1xf32> to vector<8x128xf32>
    %167 = arith.mulf %166, %119 : vector<8x128xf32>
    %168 = arith.addf %158, %167 : vector<8x128xf32>
    %169 = arith.addf %120, %158 : vector<8x128xf32>
    %c2_i32 = arith.constant 2 : i32
    %c8_i32_49 = arith.constant 8 : i32
    %170 = arith.muli %c2_i32, %c8_i32_49 : i32
    %171 = tpu.assume_multiple %170, 8 : i32
    %172 = arith.index_cast %171 : i32 to index
    %c0_50 = arith.constant 0 : index
    %173 = vector.load %arg10[%172, %c0_50] : memref<64x384xf32, #tpu.memory_space<vmem>>, vector<8x384xf32>
    %174 = arith.index_cast %171 : i32 to index
    %c0_51 = arith.constant 0 : index
    %175 = vector.load %arg1[%174, %c0_51] : memref<64x1xf32, #tpu.memory_space<vmem>>, vector<8x1xf32>
    %c0_52 = arith.constant 0 : index
    %c0_53 = arith.constant 0 : index
    %176 = vector.load %arg4[%c0_52, %c0_53] : memref<128x384xf32, #tpu.memory_space<vmem>>, vector<128x384xf32>
    %cst_54 = arith.constant dense<0.000000e+00> : vector<8x384xf32>
    %177 = tpu.matmul %168, %176, %cst_54 {dimension_numbers = #tpu.dot_dimension_numbers<[1], [0], [0], [1], [0, 0, 1, 1], [], []>} : vector<8x128xf32>, vector<128x384xf32>, vector<8x384xf32> -> vector<8x384xf32>
    %178 = vector.broadcast %69 : vector<1x384xf32> to vector<8x384xf32>
    %179 = arith.addf %177, %178 : vector<8x384xf32>
    %180 = vector.extract_strided_slice %173 {offsets = [0, 0], sizes = [8, 128], strides = [1, 1]} : vector<8x384xf32> to vector<8x128xf32>
    %181 = vector.extract_strided_slice %179 {offsets = [0, 0], sizes = [8, 128], strides = [1, 1]} : vector<8x384xf32> to vector<8x128xf32>
    %182 = arith.addf %180, %181 : vector<8x128xf32>
    %183 = arith.negf %182 : vector<8x128xf32>
    %184 = math.exp %183 : vector<8x128xf32>
    %cst_55 = arith.constant 1.000000e+00 : f32
    %185 = vector.broadcast %cst_55 : f32 to vector<8x128xf32>
    %186 = arith.addf %185, %184 : vector<8x128xf32>
    %187 = arith.divf %185, %186 : vector<8x128xf32>
    %188 = vector.extract_strided_slice %173 {offsets = [0, 128], sizes = [8, 128], strides = [1, 1]} : vector<8x384xf32> to vector<8x128xf32>
    %189 = vector.extract_strided_slice %179 {offsets = [0, 128], sizes = [8, 128], strides = [1, 1]} : vector<8x384xf32> to vector<8x128xf32>
    %190 = arith.addf %188, %189 : vector<8x128xf32>
    %191 = arith.negf %190 : vector<8x128xf32>
    %192 = math.exp %191 : vector<8x128xf32>
    %cst_56 = arith.constant 1.000000e+00 : f32
    %193 = vector.broadcast %cst_56 : f32 to vector<8x128xf32>
    %194 = arith.addf %193, %192 : vector<8x128xf32>
    %195 = arith.divf %193, %194 : vector<8x128xf32>
    %196 = vector.extract_strided_slice %173 {offsets = [0, 256], sizes = [8, 128], strides = [1, 1]} : vector<8x384xf32> to vector<8x128xf32>
    %197 = vector.extract_strided_slice %179 {offsets = [0, 256], sizes = [8, 128], strides = [1, 1]} : vector<8x384xf32> to vector<8x128xf32>
    %198 = arith.mulf %187, %197 : vector<8x128xf32>
    %199 = arith.addf %196, %198 : vector<8x128xf32>
    %200 = math.tanh %199 : vector<8x128xf32>
    %cst_57 = arith.constant 1.000000e+00 : f32
    %201 = vector.broadcast %cst_57 : f32 to vector<8x128xf32>
    %202 = arith.subf %201, %195 : vector<8x128xf32>
    %203 = arith.mulf %202, %200 : vector<8x128xf32>
    %204 = arith.mulf %195, %168 : vector<8x128xf32>
    %205 = arith.addf %203, %204 : vector<8x128xf32>
    %206 = vector.broadcast %175 : vector<8x1xf32> to vector<8x128xf32>
    %207 = arith.mulf %206, %205 : vector<8x128xf32>
    %c8_i32_58 = arith.constant 8 : i32
    %208 = arith.muli %c2_i32, %c8_i32_58 : i32
    %c8_i32_59 = arith.constant 8 : i32
    %209 = arith.addi %208, %c8_i32_59 : i32
    %210 = tpu.assume_multiple %209, 8 : i32
    %211 = arith.index_cast %210 : i32 to index
    %c0_60 = arith.constant 0 : index
    %212 = vector.load %arg11[%211, %c0_60] : memref<80x128xf32, #tpu.memory_space<vmem>>, vector<8x128xf32>
    tpu.vector_store %arg11[%211, %c0_60], %207 {strides = array<i32>} : memref<80x128xf32, #tpu.memory_space<vmem>>, vector<8x128xf32>,
    %cst_61 = arith.constant 1.000000e+00 : f32
    %213 = vector.broadcast %cst_61 : f32 to vector<8x1xf32>
    %214 = arith.subf %213, %175 : vector<8x1xf32>
    %215 = vector.broadcast %214 : vector<8x1xf32> to vector<8x128xf32>
    %216 = arith.mulf %215, %168 : vector<8x128xf32>
    %217 = arith.addf %207, %216 : vector<8x128xf32>
    %218 = arith.addf %169, %207 : vector<8x128xf32>
    %c3_i32 = arith.constant 3 : i32
    %c8_i32_62 = arith.constant 8 : i32
    %219 = arith.muli %c3_i32, %c8_i32_62 : i32
    %220 = tpu.assume_multiple %219, 8 : i32
    %221 = arith.index_cast %220 : i32 to index
    %c0_63 = arith.constant 0 : index
    %222 = vector.load %arg10[%221, %c0_63] : memref<64x384xf32, #tpu.memory_space<vmem>>, vector<8x384xf32>
    %223 = arith.index_cast %220 : i32 to index
    %c0_64 = arith.constant 0 : index
    %224 = vector.load %arg1[%223, %c0_64] : memref<64x1xf32, #tpu.memory_space<vmem>>, vector<8x1xf32>
    %c0_65 = arith.constant 0 : index
    %c0_66 = arith.constant 0 : index
    %225 = vector.load %arg4[%c0_65, %c0_66] : memref<128x384xf32, #tpu.memory_space<vmem>>, vector<128x384xf32>
    %cst_67 = arith.constant dense<0.000000e+00> : vector<8x384xf32>
    %226 = tpu.matmul %217, %225, %cst_67 {dimension_numbers = #tpu.dot_dimension_numbers<[1], [0], [0], [1], [0, 0, 1, 1], [], []>} : vector<8x128xf32>, vector<128x384xf32>, vector<8x384xf32> -> vector<8x384xf32>
    %227 = vector.broadcast %69 : vector<1x384xf32> to vector<8x384xf32>
    %228 = arith.addf %226, %227 : vector<8x384xf32>
    %229 = vector.extract_strided_slice %222 {offsets = [0, 0], sizes = [8, 128], strides = [1, 1]} : vector<8x384xf32> to vector<8x128xf32>
    %230 = vector.extract_strided_slice %228 {offsets = [0, 0], sizes = [8, 128], strides = [1, 1]} : vector<8x384xf32> to vector<8x128xf32>
    %231 = arith.addf %229, %230 : vector<8x128xf32>
    %232 = arith.negf %231 : vector<8x128xf32>
    %233 = math.exp %232 : vector<8x128xf32>
    %cst_68 = arith.constant 1.000000e+00 : f32
    %234 = vector.broadcast %cst_68 : f32 to vector<8x128xf32>
    %235 = arith.addf %234, %233 : vector<8x128xf32>
    %236 = arith.divf %234, %235 : vector<8x128xf32>
    %237 = vector.extract_strided_slice %222 {offsets = [0, 128], sizes = [8, 128], strides = [1, 1]} : vector<8x384xf32> to vector<8x128xf32>
    %238 = vector.extract_strided_slice %228 {offsets = [0, 128], sizes = [8, 128], strides = [1, 1]} : vector<8x384xf32> to vector<8x128xf32>
    %239 = arith.addf %237, %238 : vector<8x128xf32>
    %240 = arith.negf %239 : vector<8x128xf32>
    %241 = math.exp %240 : vector<8x128xf32>
    %cst_69 = arith.constant 1.000000e+00 : f32
    %242 = vector.broadcast %cst_69 : f32 to vector<8x128xf32>
    %243 = arith.addf %242, %241 : vector<8x128xf32>
    %244 = arith.divf %242, %243 : vector<8x128xf32>
    %245 = vector.extract_strided_slice %222 {offsets = [0, 256], sizes = [8, 128], strides = [1, 1]} : vector<8x384xf32> to vector<8x128xf32>
    %246 = vector.extract_strided_slice %228 {offsets = [0, 256], sizes = [8, 128], strides = [1, 1]} : vector<8x384xf32> to vector<8x128xf32>
    %247 = arith.mulf %236, %246 : vector<8x128xf32>
    %248 = arith.addf %245, %247 : vector<8x128xf32>
    %249 = math.tanh %248 : vector<8x128xf32>
    %cst_70 = arith.constant 1.000000e+00 : f32
    %250 = vector.broadcast %cst_70 : f32 to vector<8x128xf32>
    %251 = arith.subf %250, %244 : vector<8x128xf32>
    %252 = arith.mulf %251, %249 : vector<8x128xf32>
    %253 = arith.mulf %244, %217 : vector<8x128xf32>
    %254 = arith.addf %252, %253 : vector<8x128xf32>
    %255 = vector.broadcast %224 : vector<8x1xf32> to vector<8x128xf32>
    %256 = arith.mulf %255, %254 : vector<8x128xf32>
    %c8_i32_71 = arith.constant 8 : i32
    %257 = arith.muli %c3_i32, %c8_i32_71 : i32
    %c8_i32_72 = arith.constant 8 : i32
    %258 = arith.addi %257, %c8_i32_72 : i32
    %259 = tpu.assume_multiple %258, 8 : i32
    %260 = arith.index_cast %259 : i32 to index
    %c0_73 = arith.constant 0 : index
    %261 = vector.load %arg11[%260, %c0_73] : memref<80x128xf32, #tpu.memory_space<vmem>>, vector<8x128xf32>
    tpu.vector_store %arg11[%260, %c0_73], %256 {strides = array<i32>} : memref<80x128xf32, #tpu.memory_space<vmem>>, vector<8x128xf32>,
    %cst_74 = arith.constant 1.000000e+00 : f32
    %262 = vector.broadcast %cst_74 : f32 to vector<8x1xf32>
    %263 = arith.subf %262, %224 : vector<8x1xf32>
    %264 = vector.broadcast %263 : vector<8x1xf32> to vector<8x128xf32>
    %265 = arith.mulf %264, %217 : vector<8x128xf32>
    %266 = arith.addf %256, %265 : vector<8x128xf32>
    %267 = arith.addf %218, %256 : vector<8x128xf32>
    %c4_i32 = arith.constant 4 : i32
    %c8_i32_75 = arith.constant 8 : i32
    %268 = arith.muli %c4_i32, %c8_i32_75 : i32
    %269 = tpu.assume_multiple %268, 8 : i32
    %270 = arith.index_cast %269 : i32 to index
    %c0_76 = arith.constant 0 : index
    %271 = vector.load %arg10[%270, %c0_76] : memref<64x384xf32, #tpu.memory_space<vmem>>, vector<8x384xf32>
    %272 = arith.index_cast %269 : i32 to index
    %c0_77 = arith.constant 0 : index
    %273 = vector.load %arg1[%272, %c0_77] : memref<64x1xf32, #tpu.memory_space<vmem>>, vector<8x1xf32>
    %c0_78 = arith.constant 0 : index
    %c0_79 = arith.constant 0 : index
    %274 = vector.load %arg4[%c0_78, %c0_79] : memref<128x384xf32, #tpu.memory_space<vmem>>, vector<128x384xf32>
    %cst_80 = arith.constant dense<0.000000e+00> : vector<8x384xf32>
    %275 = tpu.matmul %266, %274, %cst_80 {dimension_numbers = #tpu.dot_dimension_numbers<[1], [0], [0], [1], [0, 0, 1, 1], [], []>} : vector<8x128xf32>, vector<128x384xf32>, vector<8x384xf32> -> vector<8x384xf32>
    %276 = vector.broadcast %69 : vector<1x384xf32> to vector<8x384xf32>
    %277 = arith.addf %275, %276 : vector<8x384xf32>
    %278 = vector.extract_strided_slice %271 {offsets = [0, 0], sizes = [8, 128], strides = [1, 1]} : vector<8x384xf32> to vector<8x128xf32>
    %279 = vector.extract_strided_slice %277 {offsets = [0, 0], sizes = [8, 128], strides = [1, 1]} : vector<8x384xf32> to vector<8x128xf32>
    %280 = arith.addf %278, %279 : vector<8x128xf32>
    %281 = arith.negf %280 : vector<8x128xf32>
    %282 = math.exp %281 : vector<8x128xf32>
    %cst_81 = arith.constant 1.000000e+00 : f32
    %283 = vector.broadcast %cst_81 : f32 to vector<8x128xf32>
    %284 = arith.addf %283, %282 : vector<8x128xf32>
    %285 = arith.divf %283, %284 : vector<8x128xf32>
    %286 = vector.extract_strided_slice %271 {offsets = [0, 128], sizes = [8, 128], strides = [1, 1]} : vector<8x384xf32> to vector<8x128xf32>
    %287 = vector.extract_strided_slice %277 {offsets = [0, 128], sizes = [8, 128], strides = [1, 1]} : vector<8x384xf32> to vector<8x128xf32>
    %288 = arith.addf %286, %287 : vector<8x128xf32>
    %289 = arith.negf %288 : vector<8x128xf32>
    %290 = math.exp %289 : vector<8x128xf32>
    %cst_82 = arith.constant 1.000000e+00 : f32
    %291 = vector.broadcast %cst_82 : f32 to vector<8x128xf32>
    %292 = arith.addf %291, %290 : vector<8x128xf32>
    %293 = arith.divf %291, %292 : vector<8x128xf32>
    %294 = vector.extract_strided_slice %271 {offsets = [0, 256], sizes = [8, 128], strides = [1, 1]} : vector<8x384xf32> to vector<8x128xf32>
    %295 = vector.extract_strided_slice %277 {offsets = [0, 256], sizes = [8, 128], strides = [1, 1]} : vector<8x384xf32> to vector<8x128xf32>
    %296 = arith.mulf %285, %295 : vector<8x128xf32>
    %297 = arith.addf %294, %296 : vector<8x128xf32>
    %298 = math.tanh %297 : vector<8x128xf32>
    %cst_83 = arith.constant 1.000000e+00 : f32
    %299 = vector.broadcast %cst_83 : f32 to vector<8x128xf32>
    %300 = arith.subf %299, %293 : vector<8x128xf32>
    %301 = arith.mulf %300, %298 : vector<8x128xf32>
    %302 = arith.mulf %293, %266 : vector<8x128xf32>
    %303 = arith.addf %301, %302 : vector<8x128xf32>
    %304 = vector.broadcast %273 : vector<8x1xf32> to vector<8x128xf32>
    %305 = arith.mulf %304, %303 : vector<8x128xf32>
    %c8_i32_84 = arith.constant 8 : i32
    %306 = arith.muli %c4_i32, %c8_i32_84 : i32
    %c8_i32_85 = arith.constant 8 : i32
    %307 = arith.addi %306, %c8_i32_85 : i32
    %308 = tpu.assume_multiple %307, 8 : i32
    %309 = arith.index_cast %308 : i32 to index
    %c0_86 = arith.constant 0 : index
    %310 = vector.load %arg11[%309, %c0_86] : memref<80x128xf32, #tpu.memory_space<vmem>>, vector<8x128xf32>
    tpu.vector_store %arg11[%309, %c0_86], %305 {strides = array<i32>} : memref<80x128xf32, #tpu.memory_space<vmem>>, vector<8x128xf32>,
    %cst_87 = arith.constant 1.000000e+00 : f32
    %311 = vector.broadcast %cst_87 : f32 to vector<8x1xf32>
    %312 = arith.subf %311, %273 : vector<8x1xf32>
    %313 = vector.broadcast %312 : vector<8x1xf32> to vector<8x128xf32>
    %314 = arith.mulf %313, %266 : vector<8x128xf32>
    %315 = arith.addf %305, %314 : vector<8x128xf32>
    %316 = arith.addf %267, %305 : vector<8x128xf32>
    %c5_i32 = arith.constant 5 : i32
    %c8_i32_88 = arith.constant 8 : i32
    %317 = arith.muli %c5_i32, %c8_i32_88 : i32
    %318 = tpu.assume_multiple %317, 8 : i32
    %319 = arith.index_cast %318 : i32 to index
    %c0_89 = arith.constant 0 : index
    %320 = vector.load %arg10[%319, %c0_89] : memref<64x384xf32, #tpu.memory_space<vmem>>, vector<8x384xf32>
    %321 = arith.index_cast %318 : i32 to index
    %c0_90 = arith.constant 0 : index
    %322 = vector.load %arg1[%321, %c0_90] : memref<64x1xf32, #tpu.memory_space<vmem>>, vector<8x1xf32>
    %c0_91 = arith.constant 0 : index
    %c0_92 = arith.constant 0 : index
    %323 = vector.load %arg4[%c0_91, %c0_92] : memref<128x384xf32, #tpu.memory_space<vmem>>, vector<128x384xf32>
    %cst_93 = arith.constant dense<0.000000e+00> : vector<8x384xf32>
    %324 = tpu.matmul %315, %323, %cst_93 {dimension_numbers = #tpu.dot_dimension_numbers<[1], [0], [0], [1], [0, 0, 1, 1], [], []>} : vector<8x128xf32>, vector<128x384xf32>, vector<8x384xf32> -> vector<8x384xf32>
    %325 = vector.broadcast %69 : vector<1x384xf32> to vector<8x384xf32>
    %326 = arith.addf %324, %325 : vector<8x384xf32>
    %327 = vector.extract_strided_slice %320 {offsets = [0, 0], sizes = [8, 128], strides = [1, 1]} : vector<8x384xf32> to vector<8x128xf32>
    %328 = vector.extract_strided_slice %326 {offsets = [0, 0], sizes = [8, 128], strides = [1, 1]} : vector<8x384xf32> to vector<8x128xf32>
    %329 = arith.addf %327, %328 : vector<8x128xf32>
    %330 = arith.negf %329 : vector<8x128xf32>
    %331 = math.exp %330 : vector<8x128xf32>
    %cst_94 = arith.constant 1.000000e+00 : f32
    %332 = vector.broadcast %cst_94 : f32 to vector<8x128xf32>
    %333 = arith.addf %332, %331 : vector<8x128xf32>
    %334 = arith.divf %332, %333 : vector<8x128xf32>
    %335 = vector.extract_strided_slice %320 {offsets = [0, 128], sizes = [8, 128], strides = [1, 1]} : vector<8x384xf32> to vector<8x128xf32>
    %336 = vector.extract_strided_slice %326 {offsets = [0, 128], sizes = [8, 128], strides = [1, 1]} : vector<8x384xf32> to vector<8x128xf32>
    %337 = arith.addf %335, %336 : vector<8x128xf32>
    %338 = arith.negf %337 : vector<8x128xf32>
    %339 = math.exp %338 : vector<8x128xf32>
    %cst_95 = arith.constant 1.000000e+00 : f32
    %340 = vector.broadcast %cst_95 : f32 to vector<8x128xf32>
    %341 = arith.addf %340, %339 : vector<8x128xf32>
    %342 = arith.divf %340, %341 : vector<8x128xf32>
    %343 = vector.extract_strided_slice %320 {offsets = [0, 256], sizes = [8, 128], strides = [1, 1]} : vector<8x384xf32> to vector<8x128xf32>
    %344 = vector.extract_strided_slice %326 {offsets = [0, 256], sizes = [8, 128], strides = [1, 1]} : vector<8x384xf32> to vector<8x128xf32>
    %345 = arith.mulf %334, %344 : vector<8x128xf32>
    %346 = arith.addf %343, %345 : vector<8x128xf32>
    %347 = math.tanh %346 : vector<8x128xf32>
    %cst_96 = arith.constant 1.000000e+00 : f32
    %348 = vector.broadcast %cst_96 : f32 to vector<8x128xf32>
    %349 = arith.subf %348, %342 : vector<8x128xf32>
    %350 = arith.mulf %349, %347 : vector<8x128xf32>
    %351 = arith.mulf %342, %315 : vector<8x128xf32>
    %352 = arith.addf %350, %351 : vector<8x128xf32>
    %353 = vector.broadcast %322 : vector<8x1xf32> to vector<8x128xf32>
    %354 = arith.mulf %353, %352 : vector<8x128xf32>
    %c8_i32_97 = arith.constant 8 : i32
    %355 = arith.muli %c5_i32, %c8_i32_97 : i32
    %c8_i32_98 = arith.constant 8 : i32
    %356 = arith.addi %355, %c8_i32_98 : i32
    %357 = tpu.assume_multiple %356, 8 : i32
    %358 = arith.index_cast %357 : i32 to index
    %c0_99 = arith.constant 0 : index
    %359 = vector.load %arg11[%358, %c0_99] : memref<80x128xf32, #tpu.memory_space<vmem>>, vector<8x128xf32>
    tpu.vector_store %arg11[%358, %c0_99], %354 {strides = array<i32>} : memref<80x128xf32, #tpu.memory_space<vmem>>, vector<8x128xf32>,
    %cst_100 = arith.constant 1.000000e+00 : f32
    %360 = vector.broadcast %cst_100 : f32 to vector<8x1xf32>
    %361 = arith.subf %360, %322 : vector<8x1xf32>
    %362 = vector.broadcast %361 : vector<8x1xf32> to vector<8x128xf32>
    %363 = arith.mulf %362, %315 : vector<8x128xf32>
    %364 = arith.addf %354, %363 : vector<8x128xf32>
    %365 = arith.addf %316, %354 : vector<8x128xf32>
    %c6_i32 = arith.constant 6 : i32
    %c8_i32_101 = arith.constant 8 : i32
    %366 = arith.muli %c6_i32, %c8_i32_101 : i32
    %367 = tpu.assume_multiple %366, 8 : i32
    %368 = arith.index_cast %367 : i32 to index
    %c0_102 = arith.constant 0 : index
    %369 = vector.load %arg10[%368, %c0_102] : memref<64x384xf32, #tpu.memory_space<vmem>>, vector<8x384xf32>
    %370 = arith.index_cast %367 : i32 to index
    %c0_103 = arith.constant 0 : index
    %371 = vector.load %arg1[%370, %c0_103] : memref<64x1xf32, #tpu.memory_space<vmem>>, vector<8x1xf32>
    %c0_104 = arith.constant 0 : index
    %c0_105 = arith.constant 0 : index
    %372 = vector.load %arg4[%c0_104, %c0_105] : memref<128x384xf32, #tpu.memory_space<vmem>>, vector<128x384xf32>
    %cst_106 = arith.constant dense<0.000000e+00> : vector<8x384xf32>
    %373 = tpu.matmul %364, %372, %cst_106 {dimension_numbers = #tpu.dot_dimension_numbers<[1], [0], [0], [1], [0, 0, 1, 1], [], []>} : vector<8x128xf32>, vector<128x384xf32>, vector<8x384xf32> -> vector<8x384xf32>
    %374 = vector.broadcast %69 : vector<1x384xf32> to vector<8x384xf32>
    %375 = arith.addf %373, %374 : vector<8x384xf32>
    %376 = vector.extract_strided_slice %369 {offsets = [0, 0], sizes = [8, 128], strides = [1, 1]} : vector<8x384xf32> to vector<8x128xf32>
    %377 = vector.extract_strided_slice %375 {offsets = [0, 0], sizes = [8, 128], strides = [1, 1]} : vector<8x384xf32> to vector<8x128xf32>
    %378 = arith.addf %376, %377 : vector<8x128xf32>
    %379 = arith.negf %378 : vector<8x128xf32>
    %380 = math.exp %379 : vector<8x128xf32>
    %cst_107 = arith.constant 1.000000e+00 : f32
    %381 = vector.broadcast %cst_107 : f32 to vector<8x128xf32>
    %382 = arith.addf %381, %380 : vector<8x128xf32>
    %383 = arith.divf %381, %382 : vector<8x128xf32>
    %384 = vector.extract_strided_slice %369 {offsets = [0, 128], sizes = [8, 128], strides = [1, 1]} : vector<8x384xf32> to vector<8x128xf32>
    %385 = vector.extract_strided_slice %375 {offsets = [0, 128], sizes = [8, 128], strides = [1, 1]} : vector<8x384xf32> to vector<8x128xf32>
    %386 = arith.addf %384, %385 : vector<8x128xf32>
    %387 = arith.negf %386 : vector<8x128xf32>
    %388 = math.exp %387 : vector<8x128xf32>
    %cst_108 = arith.constant 1.000000e+00 : f32
    %389 = vector.broadcast %cst_108 : f32 to vector<8x128xf32>
    %390 = arith.addf %389, %388 : vector<8x128xf32>
    %391 = arith.divf %389, %390 : vector<8x128xf32>
    %392 = vector.extract_strided_slice %369 {offsets = [0, 256], sizes = [8, 128], strides = [1, 1]} : vector<8x384xf32> to vector<8x128xf32>
    %393 = vector.extract_strided_slice %375 {offsets = [0, 256], sizes = [8, 128], strides = [1, 1]} : vector<8x384xf32> to vector<8x128xf32>
    %394 = arith.mulf %383, %393 : vector<8x128xf32>
    %395 = arith.addf %392, %394 : vector<8x128xf32>
    %396 = math.tanh %395 : vector<8x128xf32>
    %cst_109 = arith.constant 1.000000e+00 : f32
    %397 = vector.broadcast %cst_109 : f32 to vector<8x128xf32>
    %398 = arith.subf %397, %391 : vector<8x128xf32>
    %399 = arith.mulf %398, %396 : vector<8x128xf32>
    %400 = arith.mulf %391, %364 : vector<8x128xf32>
    %401 = arith.addf %399, %400 : vector<8x128xf32>
    %402 = vector.broadcast %371 : vector<8x1xf32> to vector<8x128xf32>
    %403 = arith.mulf %402, %401 : vector<8x128xf32>
    %c8_i32_110 = arith.constant 8 : i32
    %404 = arith.muli %c6_i32, %c8_i32_110 : i32
    %c8_i32_111 = arith.constant 8 : i32
    %405 = arith.addi %404, %c8_i32_111 : i32
    %406 = tpu.assume_multiple %405, 8 : i32
    %407 = arith.index_cast %406 : i32 to index
    %c0_112 = arith.constant 0 : index
    %408 = vector.load %arg11[%407, %c0_112] : memref<80x128xf32, #tpu.memory_space<vmem>>, vector<8x128xf32>
    tpu.vector_store %arg11[%407, %c0_112], %403 {strides = array<i32>} : memref<80x128xf32, #tpu.memory_space<vmem>>, vector<8x128xf32>,
    %cst_113 = arith.constant 1.000000e+00 : f32
    %409 = vector.broadcast %cst_113 : f32 to vector<8x1xf32>
    %410 = arith.subf %409, %371 : vector<8x1xf32>
    %411 = vector.broadcast %410 : vector<8x1xf32> to vector<8x128xf32>
    %412 = arith.mulf %411, %364 : vector<8x128xf32>
    %413 = arith.addf %403, %412 : vector<8x128xf32>
    %414 = arith.addf %365, %403 : vector<8x128xf32>
    %c7_i32 = arith.constant 7 : i32
    %c8_i32_114 = arith.constant 8 : i32
    %415 = arith.muli %c7_i32, %c8_i32_114 : i32
    %416 = tpu.assume_multiple %415, 8 : i32
    %417 = arith.index_cast %416 : i32 to index
    %c0_115 = arith.constant 0 : index
    %418 = vector.load %arg10[%417, %c0_115] : memref<64x384xf32, #tpu.memory_space<vmem>>, vector<8x384xf32>
    %419 = arith.index_cast %416 : i32 to index
    %c0_116 = arith.constant 0 : index
    %420 = vector.load %arg1[%419, %c0_116] : memref<64x1xf32, #tpu.memory_space<vmem>>, vector<8x1xf32>
    %c0_117 = arith.constant 0 : index
    %c0_118 = arith.constant 0 : index
    %421 = vector.load %arg4[%c0_117, %c0_118] : memref<128x384xf32, #tpu.memory_space<vmem>>, vector<128x384xf32>
    %cst_119 = arith.constant dense<0.000000e+00> : vector<8x384xf32>
    %422 = tpu.matmul %413, %421, %cst_119 {dimension_numbers = #tpu.dot_dimension_numbers<[1], [0], [0], [1], [0, 0, 1, 1], [], []>} : vector<8x128xf32>, vector<128x384xf32>, vector<8x384xf32> -> vector<8x384xf32>
    %423 = vector.broadcast %69 : vector<1x384xf32> to vector<8x384xf32>
    %424 = arith.addf %422, %423 : vector<8x384xf32>
    %425 = vector.extract_strided_slice %418 {offsets = [0, 0], sizes = [8, 128], strides = [1, 1]} : vector<8x384xf32> to vector<8x128xf32>
    %426 = vector.extract_strided_slice %424 {offsets = [0, 0], sizes = [8, 128], strides = [1, 1]} : vector<8x384xf32> to vector<8x128xf32>
    %427 = arith.addf %425, %426 : vector<8x128xf32>
    %428 = arith.negf %427 : vector<8x128xf32>
    %429 = math.exp %428 : vector<8x128xf32>
    %cst_120 = arith.constant 1.000000e+00 : f32
    %430 = vector.broadcast %cst_120 : f32 to vector<8x128xf32>
    %431 = arith.addf %430, %429 : vector<8x128xf32>
    %432 = arith.divf %430, %431 : vector<8x128xf32>
    %433 = vector.extract_strided_slice %418 {offsets = [0, 128], sizes = [8, 128], strides = [1, 1]} : vector<8x384xf32> to vector<8x128xf32>
    %434 = vector.extract_strided_slice %424 {offsets = [0, 128], sizes = [8, 128], strides = [1, 1]} : vector<8x384xf32> to vector<8x128xf32>
    %435 = arith.addf %433, %434 : vector<8x128xf32>
    %436 = arith.negf %435 : vector<8x128xf32>
    %437 = math.exp %436 : vector<8x128xf32>
    %cst_121 = arith.constant 1.000000e+00 : f32
    %438 = vector.broadcast %cst_121 : f32 to vector<8x128xf32>
    %439 = arith.addf %438, %437 : vector<8x128xf32>
    %440 = arith.divf %438, %439 : vector<8x128xf32>
    %441 = vector.extract_strided_slice %418 {offsets = [0, 256], sizes = [8, 128], strides = [1, 1]} : vector<8x384xf32> to vector<8x128xf32>
    %442 = vector.extract_strided_slice %424 {offsets = [0, 256], sizes = [8, 128], strides = [1, 1]} : vector<8x384xf32> to vector<8x128xf32>
    %443 = arith.mulf %432, %442 : vector<8x128xf32>
    %444 = arith.addf %441, %443 : vector<8x128xf32>
    %445 = math.tanh %444 : vector<8x128xf32>
    %cst_122 = arith.constant 1.000000e+00 : f32
    %446 = vector.broadcast %cst_122 : f32 to vector<8x128xf32>
    %447 = arith.subf %446, %440 : vector<8x128xf32>
    %448 = arith.mulf %447, %445 : vector<8x128xf32>
    %449 = arith.mulf %440, %413 : vector<8x128xf32>
    %450 = arith.addf %448, %449 : vector<8x128xf32>
    %451 = vector.broadcast %420 : vector<8x1xf32> to vector<8x128xf32>
    %452 = arith.mulf %451, %450 : vector<8x128xf32>
    %c8_i32_123 = arith.constant 8 : i32
    %453 = arith.muli %c7_i32, %c8_i32_123 : i32
    %c8_i32_124 = arith.constant 8 : i32
    %454 = arith.addi %453, %c8_i32_124 : i32
    %455 = tpu.assume_multiple %454, 8 : i32
    %456 = arith.index_cast %455 : i32 to index
    %c0_125 = arith.constant 0 : index
    %457 = vector.load %arg11[%456, %c0_125] : memref<80x128xf32, #tpu.memory_space<vmem>>, vector<8x128xf32>
    tpu.vector_store %arg11[%456, %c0_125], %452 {strides = array<i32>} : memref<80x128xf32, #tpu.memory_space<vmem>>, vector<8x128xf32>,
    %cst_126 = arith.constant 1.000000e+00 : f32
    %458 = vector.broadcast %cst_126 : f32 to vector<8x1xf32>
    %459 = arith.subf %458, %420 : vector<8x1xf32>
    %460 = vector.broadcast %459 : vector<8x1xf32> to vector<8x128xf32>
    %461 = arith.mulf %460, %413 : vector<8x128xf32>
    %462 = arith.addf %452, %461 : vector<8x128xf32>
    %463 = arith.addf %414, %452 : vector<8x128xf32>
    %c8_i32_127 = arith.constant 8 : i32
    %cst_128 = arith.constant 1.250000e-01 : f32
    %464 = vector.broadcast %cst_128 : f32 to vector<8x128xf32>
    %465 = arith.mulf %463, %464 : vector<8x128xf32>
    %c0_129 = arith.constant 0 : index
    %c128 = arith.constant 128 : index
    %466 = vector.load %arg9[%c0_129, %c128] : memref<8x384xf32, #tpu.memory_space<vmem>>, vector<8x128xf32>
    tpu.vector_store %arg9[%c0_129, %c128], %465 {strides = array<i32>} : memref<8x384xf32, #tpu.memory_space<vmem>>, vector<8x128xf32>,
    %c0_130 = arith.constant 0 : index
    %c0_131 = arith.constant 0 : index
    %467 = vector.load %arg8[%c0_130, %c0_131] : memref<1x128xf32, #tpu.memory_space<vmem>>, vector<1x128xf32>
    %cst_132 = arith.constant 0.000000e+00 : f32
    %468 = vector.broadcast %cst_132 : f32 to vector<8x128xf32>
    %c0_133 = arith.constant 0 : index
    %c0_134 = arith.constant 0 : index
    %469 = vector.load %arg11[%c0_133, %c0_134] : memref<80x128xf32, #tpu.memory_space<vmem>>, vector<64x128xf32>
    %470 = arith.truncf %469 : vector<64x128xf32> to vector<64x128xbf16>
    %c0_135 = arith.constant 0 : index
    %c0_136 = arith.constant 0 : index
    %c0_137 = arith.constant 0 : index
    %471 = vector.load %arg7[%c0_135, %c0_136, %c0_137] : memref<3x128x128xbf16, #tpu.memory_space<vmem>>, vector<1x128x128xbf16>
    %472 = vector.shape_cast %471 : vector<1x128x128xbf16> to vector<128x128xbf16>
    %cst_138 = arith.constant dense<0.000000e+00> : vector<64x128xf32>
    %473 = tpu.matmul %470, %472, %cst_138 {dimension_numbers = #tpu.dot_dimension_numbers<[1], [0], [0], [1], [0, 0, 1, 1], [], []>} : vector<64x128xbf16>, vector<128x128xbf16>, vector<64x128xf32> -> vector<64x128xf32>
    %c8 = arith.constant 8 : index
    %c0_139 = arith.constant 0 : index
    %474 = vector.load %arg11[%c8, %c0_139] : memref<80x128xf32, #tpu.memory_space<vmem>>, vector<64x128xf32>
    %475 = arith.truncf %474 : vector<64x128xf32> to vector<64x128xbf16>
    %c1 = arith.constant 1 : index
    %c0_140 = arith.constant 0 : index
    %c0_141 = arith.constant 0 : index
    %476 = vector.load %arg7[%c1, %c0_140, %c0_141] : memref<3x128x128xbf16, #tpu.memory_space<vmem>>, vector<1x128x128xbf16>
    %477 = vector.shape_cast %476 : vector<1x128x128xbf16> to vector<128x128xbf16>
    %cst_142 = arith.constant dense<0.000000e+00> : vector<64x128xf32>
    %478 = tpu.matmul %475, %477, %cst_142 {dimension_numbers = #tpu.dot_dimension_numbers<[1], [0], [0], [1], [0, 0, 1, 1], [], []>} : vector<64x128xbf16>, vector<128x128xbf16>, vector<64x128xf32> -> vector<64x128xf32>
    %479 = arith.addf %473, %478 : vector<64x128xf32>
    %c16 = arith.constant 16 : index
    %c0_143 = arith.constant 0 : index
    %480 = vector.load %arg11[%c16, %c0_143] : memref<80x128xf32, #tpu.memory_space<vmem>>, vector<64x128xf32>
    %481 = arith.truncf %480 : vector<64x128xf32> to vector<64x128xbf16>
    %c2 = arith.constant 2 : index
    %c0_144 = arith.constant 0 : index
    %c0_145 = arith.constant 0 : index
    %482 = vector.load %arg7[%c2, %c0_144, %c0_145] : memref<3x128x128xbf16, #tpu.memory_space<vmem>>, vector<1x128x128xbf16>
    %483 = vector.shape_cast %482 : vector<1x128x128xbf16> to vector<128x128xbf16>
    %cst_146 = arith.constant dense<0.000000e+00> : vector<64x128xf32>
    %484 = tpu.matmul %481, %483, %cst_146 {dimension_numbers = #tpu.dot_dimension_numbers<[1], [0], [0], [1], [0, 0, 1, 1], [], []>} : vector<64x128xbf16>, vector<128x128xbf16>, vector<64x128xf32> -> vector<64x128xf32>
    %485 = arith.addf %479, %484 : vector<64x128xf32>
    %486 = vector.broadcast %467 : vector<1x128xf32> to vector<64x128xf32>
    %487 = arith.addf %485, %486 : vector<64x128xf32>
    %cst_147 = arith.constant 0.000000e+00 : f32
    %488 = vector.broadcast %cst_147 : f32 to vector<64x128xf32>
    %489 = arith.maximumf %487, %488 : vector<64x128xf32>
    %490 = vector.shape_cast %489 : vector<64x128xf32> to vector<8x8x128xf32>
    %cst_148 = arith.constant dense<0xFF800000> : vector<8x128xf32>
    %491 = vector.multi_reduction <maximumf>, %490, %cst_148 [0] : vector<8x8x128xf32> to vector<8x128xf32>
    %492 = arith.maximumf %468, %491 : vector<8x128xf32>
    %c0_149 = arith.constant 0 : index
    %c256 = arith.constant 256 : index
    %493 = vector.load %arg9[%c0_149, %c256] : memref<8x384xf32, #tpu.memory_space<vmem>>, vector<8x128xf32>
    tpu.vector_store %arg9[%c0_149, %c256], %492 {strides = array<i32>} : memref<8x384xf32, #tpu.memory_space<vmem>>, vector<8x128xf32>,
    return
  }
}

</mosaic_0001>

<bundles_post_ra>
// kernel: tpu_custom_call.1
= control target key start
LH: loop header
LB: loop body
LE: loop exit
PB: predicated region body
PF: predicated region fallthrough
CT: control target
= control target key end

     0   :  { %14 = vsyncpa [#allocation5], 0  ;;  %s4874_s0 = inlined_call_operand.vmem [shape: s32[8,8], index: 0, kind: input, shape index: {}]   ;;  %s4875_s1 = inlined_call_operand.vmem [shape: f32[64,1], index: 1, kind: input, shape index: {}]   ;;  %s4876_s2 = inlined_call_operand.vmem [shape: bf16[64,32], index: 2, kind: input, shape index: {}]   ;;  %s4877_s3 = inlined_call_operand.vmem [shape: bf16[32,384], index: 3, kind: input, shape index: {}]   ;;  %s4878_s4 = inlined_call_operand.hbm [shape: f32[128,384], index: 4, kind: input, shape index: {}]   ;;  %s4879_s5 = inlined_call_operand.vmem [shape: f32[1,384], index: 5, kind: input, shape index: {}]   ;;  %s4880_s6 = inlined_call_operand.vmem [shape: f32[1,384], index: 6, kind: input, shape index: {}]   ;;  %s4881_s7 = inlined_call_operand.hbm [shape: bf16[3,128,128], index: 7, kind: input, shape index: {}]   ;;  %s4882_s8 = inlined_call_operand.vmem [shape: f32[1,128], index: 8, kind: input, shape index: {}]   ;;  %s4883_s9 = inlined_call_operand.hbm [shape: f32[8,384], index: 9, kind: output, shape index: {}]  }
   0x1   :  { %15 = vsyncpa [#allocation8], 0 }
   0x2   :  { %16 = vsyncpa [#allocation6], 0  ;;  %s4053_s30 = smov [#allocation4]   ;;  %s3981_s13 = scalar_lea.hbm %s4878_s4, 6144 }
   0x3   :  { %s30_s10 = sshll.u32 %s4053_s30, 4  ;;  %p3982_p0 = scmp.ne.s32.totalorder %s4878_s4, %s3981_s13  ;;  %s31_s10 = int_to_ptr.vmem [resolvable:$true] %s30_s10 }
   0x4   :  { %p3985_p1 = scmp.lt.u32.totalorder %s3981_s13, %s4878_s4 }
   0x6   :  { %p3987_p2 = pnand %p3985_p1, %p3982_p0 }
   0x8   :  { %3990 = shalt.err (!%p3987_p2)
}
   0x9   :  { %s3991_s18 = scalar_lea.vmem %s31_s10, 6144  ;;  %p3996_p4 = scmp.lt.s32.totalorder %s31_s10, %s31_s10 }
   0xa   :  { %p3992_p3 = scmp.ne.s32.totalorder %s31_s10, %s3991_s18  ;;  %p3997_p5 = scmp.lt.s32.totalorder %s3991_s18, %s3991_s18 }
   0xc   :  { %p3998_p6 = por %p3997_p5, %p3996_p4 }
   0xe   :  { %p3999_p7 = pnand %p3998_p6, %p3992_p3 }
  0x10   :  { %4002 = shalt.err (!%p3999_p7)
}
  0x11   :  { %s4054_s19 = smov 384   ;;  %s4055_s20 = smov 24  }
  0x12   :  { %36 = dma.hbm_to_vmem [thread:$0]  %s4878_s4, 6144, %s31_s10, [#allocation5], %s4054_s19, %s4054_s19, %s4055_s20  }
  0x13   :  { %s4056_s23 = smov [#allocation7]   ;;  %s4003_s27 = scalar_lea.hbm %s4881_s7, 3072 }
  0x14   :  { %s46_s24 = sshll.u32 %s4056_s23, 4  ;;  %p4004_p8 = scmp.ne.s32.totalorder %s4881_s7, %s4003_s27  ;;  %s47_s24 = int_to_ptr.vmem [resolvable:$true] %s46_s24 }
  0x15   :  { %p4007_p9 = scmp.lt.u32.totalorder %s4003_s27, %s4881_s7 }
  0x17   :  { %p4009_p10 = pnand %p4007_p9, %p4004_p8 }
  0x19   :  { %4012 = shalt.err (!%p4009_p10)
}
  0x1a   :  { %s4013_s12 = scalar_lea.vmem %s47_s24, 3072  ;;  %p4018_p12 = scmp.lt.s32.totalorder %s47_s24, %s47_s24 }
  0x1b   :  { %p4014_p11 = scmp.ne.s32.totalorder %s47_s24, %s4013_s12  ;;  %p4019_p13 = scmp.lt.s32.totalorder %s4013_s12, %s4013_s12 }
  0x1d   :  { %p4020_p0 = por %p4019_p13, %p4018_p12 }
  0x1f   :  { %p4021_p1 = pnand %p4020_p0, %p4014_p11 }
  0x21   :  { %4024 = shalt.err (!%p4021_p1)
}
  0x22   :  { %s4057_s4 = smov 64   ;;  %s4058_s10 = smov 4  }
  0x23   :  { %52 = dma.hbm_to_vmem [thread:$0]  %s4881_s7, 3072, %s47_s24, [#allocation8], %s4057_s4, %s4057_s4, %s4058_s10  }
  0x24   :  { %4047 = dma.done.wait [#allocation5], 6144  }
  0x25   :  { %4048 = vsyncadd [#allocation5], 4294961152 }
  0x26   :  { %4049 = dma.done.wait [#allocation8], 3072  }
  0x27   :  { %4050 = vsyncadd [#allocation8], 4294964224  ;;  %v4059_v0 = vmov 0   ;;  %vm209_vm0 = vcmask 261120   ;;  %v3865_v1 = vld [vmem:[%s4877_s3 + $0x8] ss:$12 sps:$4 sm:$0xff]  }
  0x28   :  { %254 = vmatprep.mubr.bf16.mxu0 %v4059_v0  ;;  %3855 = vset.pattern.permute.xlu0 %v4059_v0  ;;  %v3866_v2 = vld [vmem:[%s4877_s3 + $0x20] ss:$12 sps:$4 sm:$0xff]   ;;  %v397_v8 = vld [vmem:[#allocation4 + $0x18] sm:$0xff]  ;;  %v404_v10 = vld [vmem:[#allocation4 + $0x50] sm:$0xff]  ;;  %v4884_v40 = vmov 0.0   ;;  %vm4062_vm1 = vmmov 0  }
  0x29   :  { %3856 = vset.pattern.permute.xlu1 %v4059_v0  ;;  %3009 = vmatprep.subr.bf16.mxu1 %v3865_v1  ;;  %v4157_v3 = vld [vmem:[%s4876_s2] sm:$0xff]   ;;  %v395_v4 = vld [vmem:[#allocation4 + $0x8] sm:$0xff]  ;;  %v401_v9 = vld [vmem:[#allocation4 + $0x38] sm:$0xff] }
  0x2a   :  { %3010 = vmatpush3.bf16.msra.mxu1 %v3865_v1  ;;  %3013 = vmatprep.mubr.msk.bf16.mxu1 %vm209_vm0, %v4157_v3  ;;  %v398_v5 = vld [vmem:[#allocation4 + $0x20] sm:$0xff]  ;;  %v4166_v11 = vld [vmem:[%s4876_s2 + $0x8] sm:$0xff]   ;;  %v4171_v13 = vpack.c.bf16 %v404_v10, %v401_v9  ;;  %v400_v14 = vld [vmem:[#allocation4 + $0x30] sm:$0xff] }
  0x2b   :  { %3011 = vmatprep.subr.bf16.mxu1 %v3866_v2  ;;  %v394_v6 = vld [vmem:[#allocation4] sm:$0xff]  ;;  %v4161_v7 = vpack.c.bf16 %v398_v5, %v395_v4  ;;  %v403_v15 = vld [vmem:[#allocation4 + $0x48] sm:$0xff]  ;;  %v409_v20 = vld [vmem:[#allocation4 + $0x78] sm:$0xff] }
  0x2c   :  { %v4168_v12 = vpack.c.bf16 %v397_v8, %v394_v6  ;;  %v407_v16 = vld [vmem:[#allocation4 + $0x68] sm:$0xff]  ;;  %v410_v17 = vld [vmem:[#allocation4 + $0x80] sm:$0xff]  ;;  %v4176_v19 = vpack.c.bf16 %v403_v15, %v400_v14  ;;  %v413_v22 = vld [vmem:[#allocation4 + $0x98] sm:$0xff]  ;;  %v4886_v15 = vmov 0.0|0.0  }
  0x2d   :  { %v406_v18 = vld [vmem:[#allocation4 + $0x60] sm:$0xff]  ;;  %v4179_v21 = vpack.c.bf16 %v410_v17, %v407_v16  ;;  %v416_v23 = vld [vmem:[#allocation4 + $0xb0] sm:$0xff]  ;;  %v4189_v25 = vld [vmem:[%s4876_s2 + $0x18] sm:$0xff]  }
  0x2e   :  { %3012 = vmatpush3.bf16.msra.mxu1 %v3866_v2  ;;  %v4184_v24 = vld [vmem:[%s4876_s2 + $0x10] sm:$0xff]   ;;  %v4197_v27 = vpack.c.bf16 %v409_v20, %v406_v18  ;;  %v3873_v29 = vld [vmem:[%s4877_s3] ss:$12 sps:$4 sm:$0xff]   ;;  %v4203_v30 = vpack.c.bf16 %v416_v23, %v413_v22  ;;  %v3874_v34 = vld [vmem:[%s4877_s3 + $0x1c] ss:$12 sps:$4 sm:$0xff]  }
  0x2f   :  { %3374 = vmatprep.subr.bf16.mxu1 %v4161_v7  ;;  %v3871_v26 = vld [vmem:[%s4877_s3 + $0x4] ss:$12 sps:$4 sm:$0xff]   ;;  %v415_v31 = vld [vmem:[#allocation4 + $0xa8] sm:$0xff]  ;;  %v421_v39 = vld [vmem:[#allocation4 + $0xd8] sm:$0xff] }
  0x30   :  { %v412_v28 = vld [vmem:[#allocation4 + $0x90] sm:$0xff]  ;;  %v419_v32 = vld [vmem:[#allocation4 + $0xc8] sm:$0xff]  ;;  %222 = vmatprep.subr.bf16.mxu0 %v3871_v26  ;;  %v422_v33 = vld [vmem:[#allocation4 + $0xe0] sm:$0xff] }
  0x31   :  { %3014 = vmatmul.mubr.msk.bf16.vlgmr.msra.gmra.mrb[0].mxu1 %vm209_vm0, %v4166_v11  ;;  %223 = vmatpush1.bf16.msra.mxu0 %v3873_v29  ;;  %v3876_v35 = vld [vmem:[%s4877_s3 + $0x18] ss:$12 sps:$4 sm:$0xff]   ;;  %v4214_v36 = vpack.c.bf16 %v415_v31, %v412_v28  ;;  %v4217_v37 = vpack.c.bf16 %v422_v33, %v419_v32  ;;  %v428_v42 = vld [vmem:[#allocation4 + $0x110] sm:$0xff]  ;;  %v427_v46 = vld [vmem:[#allocation4 + $0x108] sm:$0xff] }
  0x32   :  { %3376 = vmatpush1.bf16.msra.mxu1 %v4168_v12  ;;  %3017 = vmatprep.mubr.msk.bf16.mxu1 %vm209_vm0, %v4184_v24  ;;  %v418_v38 = vld [vmem:[#allocation4 + $0xc0] sm:$0xff]  ;;  %v425_v41 = vld [vmem:[#allocation4 + $0xf8] sm:$0xff]  ;;  %v424_v45 = vld [vmem:[#allocation4 + $0xf0] sm:$0xff] }
  0x33   :  { %3378 = vmatprep.subr.bf16.mxu1 %v4171_v13  ;;  %224 = vmatprep.subr.bf16.mxu0 %v3874_v34  ;;  %v4222_v43 = vpack.c.bf16 %v421_v39, %v418_v38  ;;  %v4225_v44 = vpack.c.bf16 %v428_v42, %v425_v41  ;;  %v393_v47 = vld [vmem:[%s4875_s1] sm:$0xff]  ;;  %v431_v48 = vld [vmem:[#allocation4 + $0x128] sm:$0xff]  ;;  %v433_v52 = vld [vmem:[#allocation4 + $0x138] sm:$0xff]  ;;  %v4242_v55 = vpack.c.bf16 %v427_v46, %v424_v45 }
  0x34   :  { %v434_v49 = vld [vmem:[#allocation4 + $0x140] sm:$0xff]  ;;  %622 = vperm.xlu0 %3855, %v393_v47   ;;  %v628_v50 = vsub.f32 1.0, %v393_v47  ;;  %v2788_v53 = vld [vmem:[%s4875_s1 + $0x10] sm:$0xff]  ;;  %v2791_v54 = vld [vmem:[%s4875_s1 + $0x18] sm:$0xff] }
  0x35   :  { %225 = vmatpush1.bf16.msra.mxu0 %v3876_v35  ;;  %v430_v51 = vld [vmem:[#allocation4 + $0x120] sm:$0xff]  ;;  %v437_v56 = vld [vmem:[#allocation4 + $0x158] sm:$0xff]  ;;  %v440_v57 = vld [vmem:[#allocation4 + $0x170] sm:$0xff]  ;;  %v1098_v58 = vsub.f32 1.0, %v2788_v53  ;;  %v1333_v59 = vsub.f32 1.0, %v2791_v54  ;;  %v4251_v62 = vpack.c.bf16 %v434_v49, %v431_v48 }
  0x36   :  { %3380 = vmatpush1.bf16.msra.mxu1 %v4176_v19  ;;  %3486 = vmatprep.subr.bf16.mxu0 %v4161_v7  ;;  %v2794_v60 = vld [vmem:[%s4875_s1 + $0x20] sm:$0xff]  ;;  %v2785_v61 = vld [vmem:[%s4875_s1 + $0x8] sm:$0xff]  ;;  %v436_v2 = vld [vmem:[#allocation4 + $0x150] sm:$0xff]  ;;  %v4256_v4 = vpack.c.bf16 %v433_v52, %v430_v51  ;;  %v4259_v5 = vpack.c.bf16 %v440_v57, %v437_v56 }
  0x37   :  { %3382 = vmatprep.subr.bf16.mxu1 %v4179_v21  ;;  %v1568_v63 = vsub.f32 1.0, %v2794_v60  ;;  %857 = vperm.xlu1 %3856, %v2785_v61   ;;  %v863_v1 = vsub.f32 1.0, %v2785_v61  ;;  %v396_v6 = vld [vmem:[#allocation4 + $0x10] sm:$0xff]  ;;  %v399_v8 = vld [vmem:[#allocation4 + $0x28] sm:$0xff]  ;;  %v402_v10 = vld [vmem:[#allocation4 + $0x40] sm:$0xff] }
  0x38   :  { %2775 = vmatmul.mubr.msk.bf16.vlgmr.msra.gmra.mrb[0].mxu0 %vm209_vm0, %v4157_v3  ;;  %631 = vperm.xlu0 %3855, %v628_v50   ;;  %v439_v3 = vld [vmem:[#allocation4 + $0x168] sm:$0xff]  ;;  %v405_v14 = vld [vmem:[#allocation4 + $0x58] sm:$0xff]  ;;  %v408_v18 = vld [vmem:[#allocation4 + $0x70] sm:$0xff] }
  0x39   :  { %3018 = vmatmul.mubr.msk.bf16.gmra.mrb[4].mxu1 %vm209_vm0, %v4189_v25  ;;  %3488 = vmatpush1.bf16.msra.mxu0 %v4168_v12  ;;  %v4266_v9 = vpack.c.bf16 %v439_v3, %v436_v2  ;;  %v2797_v16 = vld [vmem:[%s4875_s1 + $0x28] sm:$0xff]  ;;  %v4284_v17 = vpack.c.bf16 %v405_v14, %v402_v10  ;;  %v2800_v23 = vld [vmem:[%s4875_s1 + $0x30] sm:$0xff]  ;;  %v414_v26 = vld [vmem:[#allocation4 + $0xa0] sm:$0xff]  ;;  %v4069_v3 = vmov 6  }
  0x3a   :  { %3384 = vmatpush1.bf16.msra.mxu1 %v4197_v27  ;;  %522 = vmatprep.mubr.f32.mxu1 %v4884_v40  ;;  %v411_v20 = vld [vmem:[#allocation4 + $0x88] sm:$0xff]  ;;  %v1803_v22 = vsub.f32 1.0, %v2797_v16  ;;  %v417_v28 = vld [vmem:[#allocation4 + $0xb8] sm:$0xff]  ;;  %v2038_v29 = vsub.f32 1.0, %v2800_v23  ;;  %v420_v33 = vld [vmem:[#allocation4 + $0xd0] sm:$0xff] }
  0x3b   :  { %3386 = vmatprep.subr.bf16.mxu1 %v4203_v30  ;;  %3490 = vmatprep.subr.bf16.mxu0 %v4171_v13  ;;  %v2803_v31 = vld [vmem:[%s4875_s1 + $0x38] sm:$0xff]  ;;  %v4308_v32 = vpack.c.bf16 %v417_v28, %v414_v26  ;;  %v423_v34 = vld [vmem:[#allocation4 + $0xe8] sm:$0xff]  ;;  %v426_v35 = vld [vmem:[#allocation4 + $0x100] sm:$0xff] }
  0x3c   :  { %264 = vmatprep.mubr.bf16.mxu0 %v4059_v0  ;;  %866 = vperm.xlu1 %3856, %v863_v1   ;;  %v429_v38 = vld [vmem:[#allocation4 + $0x118] sm:$0xff]  ;;  %v432_v41 = vld [vmem:[#allocation4 + $0x130] sm:$0xff]  ;;  %v435_v42 = vld [vmem:[#allocation4 + $0x148] sm:$0xff] }
  0x3d   :  { %3492 = vmatpush1.bf16.msra.mxu0 %v4176_v19  ;;  %1092 = vperm.xlu0 %3855, %v2788_v53   ;;  %v4318_v39 = vpack.c.bf16 %v429_v38, %v426_v35  ;;  %v4322_v45 = vpack.c.bf16 %v435_v42, %v432_v41  ;;  %v438_v46 = vld [vmem:[#allocation4 + $0x160] sm:$0xff]  ;;  %v441_v47 = vld [vmem:[#allocation4 + $0x178] sm:$0xff] }
  0x3e   :  { %3388 = vmatpush1.bf16.msra.mxu1 %v4214_v36  ;;  %3494 = vmatprep.subr.bf16.mxu0 %v4179_v21  ;;  %v4326_v48 = vpack.c.bf16 %v441_v47, %v438_v46 }
  0x3f   :  { %3390 = vmatprep.subr.bf16.mxu1 %v4217_v37 }
  0x40   :  { %2776 = vmatmul.mubr.msk.bf16.gmra.mrb[4].mxu0 %vm209_vm0, %v4166_v11  ;;  %1101 = vperm.xlu1 %3856, %v1098_v58   ;;  %v4272_v11 = vpack.c.bf16 %v399_v8, %v396_v6 }
  0x41   :  { %3496 = vmatpush1.bf16.msra.mxu0 %v4197_v27  ;;  %274 = vmatprep.mubr.bf16.mxu0 %v4059_v0 }
  0x42   :  { %3392 = vmatpush1.bf16.msra.mxu1 %v4222_v43  ;;  %3498 = vmatprep.subr.bf16.mxu0 %v4203_v30 }
  0x43   :  { %3394 = vmatprep.subr.bf16.mxu1 %v4225_v44  ;;  %1327 = vperm.xlu0 %3855, %v2791_v54   ;;  %v4066_v54 = vmov 3  }
  0x44   :  { %1336 = vperm.xlu1 %3856, %v1333_v59   ;;  %v4068_v59 = vmov 5  }
  0x45   :  { %3500 = vmatpush1.bf16.msra.mxu0 %v4214_v36 }
  0x46   :  { %3396 = vmatpush1.bf16.msra.mxu1 %v4242_v55  ;;  %3502 = vmatprep.subr.bf16.mxu0 %v4217_v37 }
  0x47   :  { %3398 = vmatprep.subr.bf16.mxu1 %v4251_v62  ;;  %1562 = vperm.xlu0 %3855, %v2794_v60  }
  0x48   :  { %2777 = vmatmul.mubr.msk.bf16.gmra.mrb[8].mxu0 %vm209_vm0, %v4184_v24  ;;  %1571 = vperm.xlu1 %3856, %v1568_v63   ;;  %v4296_v24 = vpack.c.bf16 %v411_v20, %v408_v18 }
  0x49   :  { %3504 = vmatpush1.bf16.msra.mxu0 %v4222_v43  ;;  %284 = vmatprep.mubr.bf16.mxu0 %v4059_v0 }
  0x4a   :  { %3400 = vmatpush1.bf16.msra.mxu1 %v4256_v4  ;;  %3506 = vmatprep.subr.bf16.mxu0 %v4225_v44 }
  0x4b   :  { %3402 = vmatprep.subr.bf16.mxu1 %v4259_v5  ;;  %1797 = vperm.xlu0 %3855, %v2797_v16  }
  0x4c   :  { %1806 = vperm.xlu1 %3856, %v1803_v22  }
  0x4d   :  { %3508 = vmatpush1.bf16.msra.mxu0 %v4242_v55 }
  0x4e   :  { %3404 = vmatpush1.bf16.msra.mxu1 %v4266_v9  ;;  %3510 = vmatprep.subr.bf16.mxu0 %v4251_v62 }
  0x4f   :  { %3405 = vmatprep.subr.bf16.mxu1 %v4886_v15  ;;  %2032 = vperm.xlu0 %3855, %v2800_v23  }
  0x50   :  { %2778 = vmatmul.mubr.msk.bf16.gmra.mrb[12].mxu0 %vm209_vm0, %v4189_v25  ;;  %2041 = vperm.xlu1 %3856, %v2038_v29   ;;  %v4314_v25 = vpack.c.bf16 %v423_v34, %v420_v33 }
  0x51   :  { %523 = vmatmul.mubr.f32.vlgmr.msra.gmra.mrb[8].mxu1 %v4884_v40  ;;  %3512 = vmatpush1.bf16.msra.mxu0 %v4256_v4 }
  0x52   :  { %3407 = vmatpush3.bf16.msra.mxu1 %v4272_v11  ;;  %3053 = vmatprep.mubr.msk.f32.mxu1 %vm4062_vm1, %v4884_v40 }
  0x53   :  { %3408 = vmatprep.subr.bf16.mxu1 %v4886_v15  ;;  %992 = vmatprep.mubr.f32.mxu0 %v4884_v40 }
  0x54   :  { %3514 = vmatprep.subr.bf16.mxu0 %v4259_v5  ;;  %2267 = vperm.xlu0 %3855, %v2803_v31  }
  0x55   :  { %3516 = vmatpush1.bf16.msra.mxu0 %v4266_v9 }
  0x56   :  { %3410 = vmatpush3.bf16.msra.mxu1 %v4284_v17 }
  0x57   :  { %3411 = vmatprep.subr.bf16.mxu1 %v4886_v15 }
  0x5a   :  { %3413 = vmatpush3.bf16.msra.mxu1 %v4296_v24 }
  0x5b   :  { %3414 = vmatprep.subr.bf16.mxu1 %v4886_v15 }
  0x5e   :  { %3416 = vmatpush3.bf16.msra.mxu1 %v4308_v32 }
  0x5f   :  { %3417 = vmatprep.subr.bf16.mxu1 %v4886_v15 }
  0x62   :  { %3419 = vmatpush3.bf16.msra.mxu1 %v4314_v25 }
  0x63   :  { %3420 = vmatprep.subr.bf16.mxu1 %v4886_v15 }
  0x66   :  { %3422 = vmatpush3.bf16.msra.mxu1 %v4318_v39 }
  0x67   :  { %3423 = vmatprep.subr.bf16.mxu1 %v4886_v15 }
  0x6a   :  { %3425 = vmatpush3.bf16.msra.mxu1 %v4322_v45 }
  0x6b   :  { %3426 = vmatprep.subr.bf16.mxu1 %v4886_v15 }
  0x6e   :  { %3428 = vmatpush3.bf16.msra.mxu1 %v4326_v48 }
  0x6f   :  { %3430 = vmatprep.subr.bf16.mxu1 %v4161_v7  ;;  %v63_v7 = vlaneseq }
  0x71   :  { %3054 = vmatmul.mubr.f32.vlgmr.msra.gmra.mrb[10].mxu1 %v4884_v40 }
  0x72   :  { %3432 = vmatpush1.bf16.msra.mxu1 %v4168_v12  ;;  %757 = vmatprep.mubr.f32.mxu1 %v4884_v40  ;;  %v4350_v12 = vshrl.u32 %v63_v7, 7 }
  0x73   :  { %3434 = vmatprep.subr.bf16.mxu1 %v4171_v13 }
  0x74   :  { %v152_v13 = vsub.s32 2, %v4350_v12  ;;  %v144_v8 = vsub.s32 0, %v4350_v12 }
  0x76   :  { %3436 = vmatpush1.bf16.msra.mxu1 %v4176_v19  ;;  %v140_v19 = vld [vmem:[%s4879_s5] sm:$0x7] }
  0x77   :  { %3438 = vmatprep.subr.bf16.mxu1 %v4179_v21  ;;  %v62_v21 = vld [vmem:[%s4874_s0] sm:$0xff]  ;;  %v4394_v10 = vrot.slane %v140_v19, %v144_v8 }
  0x78   :  { %66 = vperm.xlu1 %3856, %v62_v21  }
  0x7a   :  { %3440 = vmatpush1.bf16.msra.mxu1 %v4197_v27  ;;  %v4063_v27 = vmov 1  }
  0x7b   :  { %3442 = vmatprep.subr.bf16.mxu1 %v4203_v30  ;;  %3857 = vset.pattern.permute.xlu0 %v4063_v27  ;;  %v4361_v30 = vrot.slane %v140_v19, %v152_v13 }
  0x7c   :  { %73 = vperm.xlu0 %3857, %v62_v21  }
  0x7e   :  { %3444 = vmatpush1.bf16.msra.mxu1 %v4214_v36  ;;  %v4064_v36 = vmov 2  }
  0x7f   :  { %3446 = vmatprep.subr.bf16.mxu1 %v4217_v37  ;;  %3858 = vset.pattern.permute.xlu1 %v4064_v36 }
  0x80   :  { %80 = vperm.xlu1 %3858, %v62_v21  }
  0x82   :  { %3448 = vmatpush1.bf16.msra.mxu1 %v4222_v43  ;;  %v4065_v43 = vmov 4  }
  0x83   :  { %3450 = vmatprep.subr.bf16.mxu1 %v4225_v44  ;;  %3860 = vset.pattern.permute.xlu0 %v4065_v43 }
  0x84   :  { %94 = vperm.xlu0 %3860, %v62_v21   ;;  %3859 = vset.pattern.permute.xlu1 %v4066_v54 }
  0x85   :  { %87 = vperm.xlu1 %3859, %v62_v21  }
  0x86   :  { %3452 = vmatpush1.bf16.msra.mxu1 %v4242_v55  ;;  %v4067_v55 = vmov 7  }
  0x87   :  { %3454 = vmatprep.subr.bf16.mxu1 %v4251_v62 }
  0x88   :  { %3863 = vset.pattern.permute.xlu0 %v4067_v55 }
  0x89   :  { %115 = vperm.xlu0 %3863, %v62_v21   ;;  %3861 = vset.pattern.permute.xlu1 %v4068_v59 }
  0x8a   :  { %3456 = vmatpush1.bf16.msra.mxu1 %v4256_v4  ;;  %101 = vperm.xlu1 %3861, %v62_v21  }
  0x8b   :  { %3458 = vmatprep.subr.bf16.mxu1 %v4259_v5 }
  0x8d   :  { %3864 = vset.pattern.permute.xlu0 %v4059_v0  ;;  %v148_v0 = vsub.s32 1, %v4350_v12 }
  0x8e   :  { %3460 = vmatpush1.bf16.msra.mxu1 %v4266_v9  ;;  %3862 = vset.pattern.permute.xlu1 %v4069_v3  ;;  %v386_v9 = vld [vmem:[%s4880_s6] sm:$0x7] }
  0x8f   :  { %3461 = vmatprep.subr.bf16.mxu1 %v4886_v15  ;;  %108 = vperm.xlu1 %3862, %v62_v21   ;;  %v4396_v14 = vrot.slane %v140_v19, %v148_v0  ;;  %v4398_v16 = vrot.slane %v386_v9, %v144_v8  ;;  %v4400_v18 = vrot.slane %v386_v9, %v148_v0 }
  0x90   :  { %v4408_v46 = vrot.slane %v386_v9, %v152_v13 }
  0xb3   :  { %v623_v54 = vpop.permute.xlu0 %622 }
  0xb7   :  { %v632_v59 = vpop.permute.xlu0 %631 }
 0x104   :  { %v3015_v37 = vpop.f32.mrb[0].mxu1 }
 0x105   :  { %v4364_v44 = vadd.f32 %v3015_v37, %v4361_v30  ;;  %v329_v49 = vpop.f32.mrb[1].mxu1 }
 0x106   :  { %v3016_v50 = vpop.f32.mrb[2].mxu1  ;;  %v330_v37 = vadd.f32 %v329_v49, %v4361_v30 }
 0x107   :  { %v4367_v51 = vadd.f32 %v3016_v50, %v4361_v30  ;;  %v332_v52 = vpop.f32.mrb[3].mxu1 }
 0x108   :  { %v4370_v53 = vadd.f32 %v332_v52, %v4361_v30 }
 0x10b   :  { %v256_v2 = vpop.f32.mrb[0].mxu0 }
 0x10c   :  { %v3019_v56 = vpop.f32.mrb[4].mxu1  ;;  %v258_v4 = vpop.f32.mrb[1].mxu0  ;;  %v257_v20 = vadd.f32 %v256_v2, %v4394_v10 }
 0x10d   :  { %v4373_v57 = vadd.f32 %v3019_v56, %v4361_v30  ;;  %v345_v58 = vpop.f32.mrb[5].mxu1  ;;  %v4385_v5 = vpop.f32.mrb[2].mxu0  ;;  %v259_v23 = vadd.f32 %v258_v4, %v4396_v14 }
 0x10e   :  { %v4376_v60 = vadd.f32 %v345_v58, %v4361_v30  ;;  %v3020_v61 = vpop.f32.mrb[6].mxu1  ;;  %v4387_v6 = vpop.f32.mrb[3].mxu0 }
 0x10f   :  { %4892 = vst [vmem:[#allocation13_spill] sm:$0xff] %v4373_v57  ;;  %v4380_v62 = vadd.f32 %v3020_v61, %v4361_v30  ;;  %v348_v63 = vpop.f32.mrb[7].mxu1  ;;  %v634_v61 = vmul.f32 0.0, %v632_v59 }
 0x110   :  { %v4383_v1 = vadd.f32 %v348_v63, %v4361_v30 }
 0x111   :  { %4893 = vst [vmem:[#allocation14_spill] sm:$0xff] %v4380_v62  ;;  %v1152_v62 = vld [vmem:[#allocation4 + $0x128] sm:$0xff] }
 0x112   :  { %4894 = vst [vmem:[#allocation15_spill] sm:$0xff] %v4383_v1 }
 0x124   :  { %v524_v22 = vpop.f32.mrb[8].mxu1 }
 0x125   :  { %v525_v26 = vadd.f32 %v524_v22, %v4398_v16  ;;  %v526_v28 = vpop.f32.mrb[9].mxu1 }
 0x126   :  { %v527_v29 = vadd.f32 %v526_v28, %v4400_v18 }
 0x127   :  { %v599_v31 = vadd.f32 %v525_v26, %v257_v20  ;;  %v64_v20 = vand.u32 127, %v63_v7 }
 0x128   :  { %v606_v33 = vadd.f32 %v527_v29, %v259_v23 }
 0x129   :  { %v2783_v34 = vmul.f32 -1.442695, %v599_v31  ;;  %vm121_vm10 = vcmp.eq.s32.totalorder %v64_v20, 0 }
 0x12a   :  { %v2784_v35 = vmul.f32 -1.442695, %v606_v33 }
 0x12b   :  { %3901 = vpow2.f32 %v2783_v34 }
 0x12c   :  { %3903 = vpow2.f32 %v2784_v35 }
 0x135   :  { %v3902_v38 = vpop.eup %3901 }
 0x136   :  { %v603_v41 = vadd.f32 1.0, %v3902_v38  ;;  %v3904_v42 = vpop.eup %3903 }
 0x137   :  { %v610_v47 = vadd.f32 1.0, %v3904_v42 }
 0x138   :  { %3905 = vrcp.f32 %v603_v41 }
 0x139   :  { %3907 = vrcp.f32 %v610_v47 }
 0x142   :  { %v3906_v36 = vpop.eup %3905 }
 0x143   :  { %v3908_v52 = vpop.eup %3907 }
 0x144   :  { %v595_v19 = vpop.f32.mrb[10].mxu1  ;;  %v616_v55 = vsub.f32 1.0, %v3908_v52  ;;  %v618_v58 = vmul.f32 0.0, %v3908_v52 }
 0x145   :  { %v596_v21 = vadd.f32 %v595_v19, %v4408_v46  ;;  %v3055_v27 = vpop.f32.mrb[11].mxu1 }
 0x147   :  { %v613_v43 = vmul.f32 %v3906_v36, %v596_v21  ;;  %v4488_v21 = vpop.f32.mrb[4].mxu0 }
 0x148   :  { %v4490_v36 = vpop.f32.mrb[5].mxu0 }
 0x149   :  { %v614_v50 = vadd.f32 %v613_v43, %v330_v37  ;;  %v4492_v43 = vpop.f32.mrb[6].mxu0 }
 0x14b   :  { %3909 = vtanh.f32 %v614_v50 }
 0x155   :  { %v3910_v56 = vpop.eup %3909 }
 0x156   :  { %v617_v12 = vmul.f32 %v3910_v56, %v616_v55 }
 0x158   :  { %v619_v13 = vadd.f32 %v618_v58, %v617_v12 }
 0x15a   :  { %v4412_v63 = vmul.f32 %v623_v54, %v619_v13  ;;  %v4496_v54 = vpop.f32.mrb[7].mxu0 }
 0x15b   :  { %v4498_v56 = vpop.f32.mrb[8].mxu0 }
 0x15c   :  { %4895 = vst [vmem:[#allocation16_spill] sm:$0xff] %v4412_v63  ;;  %v4415_v2 = vadd.f32 %v634_v61, %v4412_v63  ;;  %v4500_v58 = vpop.f32.mrb[9].mxu0  ;;  %v1162_v63 = vld [vmem:[#allocation4 + $0x178] sm:$0xff] }
 0x15d   :  { %v4502_v13 = vpop.f32.mrb[10].mxu0 }
 0x15e   :  { %758 = vmatmul.mubr.f32.vlgmr.msra.gmra.mrb[12].mxu1 %v4415_v2  ;;  %v4504_v59 = vpop.f32.mrb[11].mxu0 }
 0x15f   :  { %3463 = vmatpush3.bf16.msra.mxu1 %v4272_v11  ;;  %3088 = vmatprep.mubr.msk.f32.mxu1 %vm4062_vm1, %v4884_v40 }
 0x160   :  { %3464 = vmatprep.subr.bf16.mxu1 %v4886_v15 }
 0x163   :  { %3466 = vmatpush3.bf16.msra.mxu1 %v4284_v17 }
 0x164   :  { %3467 = vmatprep.subr.bf16.mxu1 %v4886_v15 }
 0x167   :  { %3469 = vmatpush3.bf16.msra.mxu1 %v4296_v24 }
 0x168   :  { %3470 = vmatprep.subr.bf16.mxu1 %v4886_v15 }
 0x16b   :  { %3472 = vmatpush3.bf16.msra.mxu1 %v4308_v32 }
 0x16c   :  { %3473 = vmatprep.subr.bf16.mxu1 %v4886_v15 }
 0x16f   :  { %3475 = vmatpush3.bf16.msra.mxu1 %v4314_v25 }
 0x170   :  { %3476 = vmatprep.subr.bf16.mxu1 %v4886_v15 }
 0x173   :  { %3478 = vmatpush3.bf16.msra.mxu1 %v4318_v39 }
 0x174   :  { %3479 = vmatprep.subr.bf16.mxu1 %v4886_v15 }
 0x177   :  { %3481 = vmatpush3.bf16.msra.mxu1 %v4322_v45 }
 0x178   :  { %3482 = vmatprep.subr.bf16.mxu1 %v4886_v15 }
 0x17b   :  { %3484 = vmatpush3.bf16.msra.mxu1 %v4326_v48 }
 0x17c   :  { %3517 = vmatprep.subr.bf16.mxu1 %v4886_v15 }
 0x17e   :  { %3089 = vmatmul.mubr.f32.vlgmr.msra.gmra.mrb[14].mxu1 %v4415_v2 }
 0x17f   :  { %3519 = vmatpush3.bf16.msra.mxu1 %v4272_v11  ;;  %3123 = vmatprep.mubr.msk.f32.mxu1 %vm4062_vm1, %v4884_v40  ;;  %v4455_v11 = vpop.permute.xlu1 %857 }
 0x180   :  { %3520 = vmatprep.subr.bf16.mxu1 %v4886_v15 }
 0x183   :  { %3522 = vmatpush3.bf16.msra.mxu1 %v4284_v17  ;;  %v4457_v17 = vpop.permute.xlu0 %1092 }
 0x184   :  { %3523 = vmatprep.subr.bf16.mxu1 %v4886_v15 }
 0x187   :  { %3525 = vmatpush3.bf16.msra.mxu1 %v4296_v24  ;;  %v4459_v24 = vpop.permute.xlu1 %866 }
 0x188   :  { %3526 = vmatprep.subr.bf16.mxu1 %v4886_v15 }
 0x18b   :  { %3528 = vmatpush3.bf16.msra.mxu1 %v4308_v32  ;;  %v4461_v32 = vpop.permute.xlu0 %1327 }
 0x18c   :  { %3529 = vmatprep.subr.bf16.mxu1 %v4886_v15 }
 0x18f   :  { %3531 = vmatpush3.bf16.msra.mxu1 %v4314_v25  ;;  %v4463_v25 = vpop.permute.xlu1 %1101 }
 0x190   :  { %3532 = vmatprep.subr.bf16.mxu1 %v4886_v15 }
 0x193   :  { %3534 = vmatpush3.bf16.msra.mxu1 %v4318_v39  ;;  %v4465_v39 = vpop.permute.xlu0 %1562  ;;  %v4467_v30 = vpop.permute.xlu1 %1336 }
 0x194   :  { %3535 = vmatprep.subr.bf16.mxu1 %v4886_v15 }
 0x197   :  { %3537 = vmatpush3.bf16.msra.mxu1 %v4322_v45  ;;  %v4469_v45 = vpop.permute.xlu1 %1571  ;;  %v4471_v49 = vpop.permute.xlu0 %1797 }
 0x198   :  { %3538 = vmatprep.subr.bf16.mxu1 %v4886_v15  ;;  %4896 = vst [vmem:[#allocation17_spill] sm:$0xff] %v4471_v49 }
 0x19b   :  { %3540 = vmatpush3.bf16.msra.mxu1 %v4326_v48  ;;  %v4473_v48 = vpop.permute.xlu1 %1806  ;;  %v4475_v3 = vpop.permute.xlu0 %2032 }
 0x19c   :  { %3573 = vmatprep.subr.bf16.mxu1 %v4886_v15  ;;  %4897 = vst [vmem:[#allocation18_spill] sm:$0xff] %v4473_v48  ;;  %4898 = vst [vmem:[#allocation19_spill] sm:$0xff] %v4475_v3 }
 0x19f   :  { %v4477_v4 = vpop.permute.xlu1 %2041  ;;  %v4479_v0 = vpop.permute.xlu0 %2267 }
 0x1a0   :  { %4899 = vst [vmem:[#allocation20_spill] sm:$0xff] %v4477_v4  ;;  %4900 = vst [vmem:[#allocation21_spill] sm:$0xff] %v4479_v0  ;;  %v1147_v0 = vld [vmem:[#allocation4 + $0x100] sm:$0xff] }
 0x1a3   :  { %v67_v8 = vpop.permute.xlu1 %66  ;;  %v74_v22 = vpop.permute.xlu0 %73 }
 0x1a4   :  { %vm68_vm2 = vcmp.eq.s32.totalorder %v67_v8, %v64_v20  ;;  %vm75_vm3 = vcmp.eq.s32.totalorder %v74_v22, %v64_v20  ;;  %v4506_v8 = vpop.f32.mrb[12].mxu0 }
 0x1a5   :  { %v2757_v23 = vsel %vm68_vm2, 1.0, %v4884_v40  ;;  %v2758_v26 = vsel %vm75_vm3, 1.0, %v4884_v40  ;;  %4901 = vst [vmem:[#allocation22_spill] sm:$0xff] %v4506_v8 }
 0x1a6   :  { %v78_v29 = vadd.f32 %v2758_v26, %v2757_v23 }
 0x1a7   :  { %v81_v9 = vpop.permute.xlu1 %80  ;;  %v95_v34 = vpop.permute.xlu0 %94 }
 0x1a8   :  { %vm82_vm4 = vcmp.eq.s32.totalorder %v81_v9, %v64_v20  ;;  %vm96_vm6 = vcmp.eq.s32.totalorder %v95_v34, %v64_v20  ;;  %v4508_v9 = vpop.f32.mrb[13].mxu0 }
 0x1a9   :  { %v2759_v31 = vsel %vm82_vm4, 1.0, %v4884_v40  ;;  %v2761_v7 = vsel %vm96_vm6, 1.0, %v4884_v40  ;;  %4902 = vst [vmem:[#allocation23_spill] sm:$0xff] %v4508_v9  ;;  %v4510_v22 = vpop.f32.mrb[14].mxu0 }
 0x1aa   :  { %v85_v35 = vadd.f32 %v2759_v31, %v78_v29  ;;  %4903 = vst [vmem:[#allocation24_spill] sm:$0xff] %v4510_v22  ;;  %v4512_v23 = vpop.f32.mrb[15].mxu0  ;;  %v263_v31 = vadd.f32 %v4387_v6, %v4396_v14  ;;  %v1158_v22 = vld [vmem:[#allocation4 + $0x158] sm:$0xff] }
 0x1ab   :  { %v88_v28 = vpop.permute.xlu1 %87  ;;  %v116_v19 = vpop.permute.xlu0 %115  ;;  %4904 = vst [vmem:[#allocation25_spill] sm:$0xff] %v4512_v23  ;;  %v1156_v23 = vld [vmem:[#allocation4 + $0x148] sm:$0xff] }
 0x1ac   :  { %vm89_vm5 = vcmp.eq.s32.totalorder %v88_v28, %v64_v20  ;;  %vm117_vm8 = vcmp.eq.s32.totalorder %v116_v19, %v64_v20 }
 0x1ad   :  { %v2760_v33 = vsel %vm89_vm5, 1.0, %v4884_v40  ;;  %v2764_v52 = vsel %vm117_vm8, 1.0, %v4884_v40 }
 0x1ae   :  { %v92_v41 = vadd.f32 %v2760_v33, %v85_v35 }
 0x1af   :  { %v102_v38 = vpop.permute.xlu1 %101 }
 0x1b0   :  { %vm103_vm7 = vcmp.eq.s32.totalorder %v102_v38, %v64_v20  ;;  %v99_v47 = vadd.f32 %v2761_v7, %v92_v41 }
 0x1b1   :  { %v2762_v42 = vsel %vm103_vm7, 1.0, %v4884_v40 }
 0x1b2   :  { %v106_v37 = vadd.f32 %v2762_v42, %v99_v47 }
 0x1b3   :  { %v109_v27 = vpop.permute.xlu1 %108 }
 0x1b4   :  { %vm110_vm9 = vcmp.eq.s32.totalorder %v109_v27, %v64_v20  ;;  %v261_v20 = vadd.f32 %v4385_v5, %v4394_v10 }
 0x1b5   :  { %v2763_v50 = vsel %vm110_vm9, 1.0, %v4884_v40 }
 0x1b6   :  { %v113_v55 = vadd.f32 %v2763_v50, %v106_v37 }
 0x1b8   :  { %v120_v12 = vadd.f32 %v2764_v52, %v113_v55 }
 0x1ba   :  { %v122_v61 = vsel %vm121_vm10, 0.0, %v120_v12 }
 0x1bb   :  { %123 = vst [vmem:[#allocation9] sm:$0xff] %v122_v61 }
 0x231   :  { %v759_v26 = vpop.f32.mrb[12].mxu1 }
 0x232   :  { %v760_v28 = vadd.f32 %v759_v26, %v4398_v16  ;;  %v761_v29 = vpop.f32.mrb[13].mxu1 }
 0x233   :  { %v762_v33 = vadd.f32 %v761_v29, %v4400_v18  ;;  %v869_v29 = vmul.f32 %v4459_v24, %v4415_v2  ;;  %v1118_v24 = vld [vmem:[#allocation4 + $0x18] sm:$0xff] }
 0x234   :  { %v834_v34 = vadd.f32 %v760_v28, %v261_v20 }
 0x235   :  { %v841_v35 = vadd.f32 %v762_v33, %v263_v31 }
 0x236   :  { %v2786_v7 = vmul.f32 -1.442695, %v834_v34  ;;  %v1119_v34 = vld [vmem:[#allocation4 + $0x20] sm:$0xff] }
 0x237   :  { %v2787_v38 = vmul.f32 -1.442695, %v841_v35 }
 0x238   :  { %3911 = vpow2.f32 %v2786_v7 }
 0x239   :  { %3913 = vpow2.f32 %v2787_v38  ;;  %v1120_v38 = vld [vmem:[#allocation4 + $0x28] sm:$0xff] }
 0x242   :  { %v3912_v41 = vpop.eup %3911 }
 0x243   :  { %v838_v42 = vadd.f32 1.0, %v3912_v41  ;;  %v3914_v47 = vpop.eup %3913 }
 0x244   :  { %v845_v19 = vadd.f32 1.0, %v3914_v47  ;;  %v1125_v47 = vld [vmem:[#allocation4 + $0x50] sm:$0xff] }
 0x245   :  { %3915 = vrcp.f32 %v838_v42  ;;  %v1122_v42 = vld [vmem:[#allocation4 + $0x38] sm:$0xff] }
 0x246   :  { %3917 = vrcp.f32 %v845_v19  ;;  %v4545_v19 = vpack.c.bf16 %v1125_v47, %v1122_v42  ;;  %v1136_v42 = vld [vmem:[#allocation4 + $0xa8] sm:$0xff]  ;;  %v1135_v47 = vld [vmem:[#allocation4 + $0xa0] sm:$0xff] }
 0x24f   :  { %v3916_v50 = vpop.eup %3915 }
 0x250   :  { %v3918_v55 = vpop.eup %3917 }
 0x251   :  { %v830_v5 = vpop.f32.mrb[14].mxu1  ;;  %v851_v12 = vsub.f32 1.0, %v3918_v55  ;;  %v853_v26 = vmul.f32 %v3918_v55, %v4415_v2  ;;  %v1115_v2 = vld [vmem:[#allocation4] sm:$0xff]  ;;  %v1128_v55 = vld [vmem:[#allocation4 + $0x68] sm:$0xff] }
 0x252   :  { %v831_v27 = vadd.f32 %v830_v5, %v4408_v46  ;;  %v3090_v37 = vpop.f32.mrb[15].mxu1  ;;  %v4538_v7 = vpack.c.bf16 %v1118_v24, %v1115_v2  ;;  %v1121_v5 = vld [vmem:[#allocation4 + $0x30] sm:$0xff]  ;;  %v1134_v2 = vld [vmem:[#allocation4 + $0x98] sm:$0xff] }
 0x253   :  { %v1123_v37 = vld [vmem:[#allocation4 + $0x40] sm:$0xff]  ;;  %v1137_v24 = vld [vmem:[#allocation4 + $0xb0] sm:$0xff] }
 0x254   :  { %v848_v6 = vmul.f32 %v3916_v50, %v831_v27  ;;  %v1124_v27 = vld [vmem:[#allocation4 + $0x48] sm:$0xff] }
 0x255   :  { %v4548_v50 = vpack.c.bf16 %v1124_v27, %v1121_v5  ;;  %v1138_v27 = vld [vmem:[#allocation4 + $0xb8] sm:$0xff] }
 0x256   :  { %v849_v52 = vadd.f32 %v848_v6, %v4370_v53  ;;  %v1116_v53 = vld [vmem:[#allocation4 + $0x8] sm:$0xff]  ;;  %v1126_v6 = vld [vmem:[#allocation4 + $0x58] sm:$0xff] }
 0x257   :  { %v4536_v35 = vpack.c.bf16 %v1119_v34, %v1116_v53  ;;  %v1132_v53 = vld [vmem:[#allocation4 + $0x88] sm:$0xff] }
 0x258   :  { %3919 = vtanh.f32 %v849_v52  ;;  %v4551_v52 = vpack.c.bf16 %v1126_v6, %v1123_v37  ;;  %v4571_v37 = vpack.c.bf16 %v1138_v27, %v1135_v47  ;;  %v1140_v6 = vld [vmem:[#allocation4 + $0xc8] sm:$0xff]  ;;  %v1145_v47 = vld [vmem:[#allocation4 + $0xf0] sm:$0xff] }
 0x259   :  { %3542 = vmatprep.subr.bf16.mxu0 %v4536_v35 }
 0x262   :  { %v3920_v61 = vpop.eup %3919 }
 0x263   :  { %v852_v20 = vmul.f32 %v3920_v61, %v851_v12  ;;  %v1131_v12 = vld [vmem:[#allocation4 + $0x80] sm:$0xff] }
 0x264   :  { %v4555_v61 = vpack.c.bf16 %v1131_v12, %v1128_v55  ;;  %v1143_v55 = vld [vmem:[#allocation4 + $0xe0] sm:$0xff] }
 0x265   :  { %v854_v28 = vadd.f32 %v853_v26, %v852_v20  ;;  %v1127_v26 = vld [vmem:[#allocation4 + $0x60] sm:$0xff]  ;;  %v1130_v20 = vld [vmem:[#allocation4 + $0x78] sm:$0xff] }
 0x266   :  { %v1139_v12 = vld [vmem:[#allocation4 + $0xc0] sm:$0xff] }
 0x267   :  { %v4526_v31 = vmul.f32 %v4455_v11, %v854_v28  ;;  %v1117_v11 = vld [vmem:[#allocation4 + $0x10] sm:$0xff] }
 0x268   :  { %v4541_v41 = vpack.c.bf16 %v1120_v38, %v1117_v11  ;;  %v1129_v28 = vld [vmem:[#allocation4 + $0x70] sm:$0xff]  ;;  %v4565_v11 = vpack.c.bf16 %v1137_v24, %v1134_v2 }
 0x269   :  { %4905 = vst [vmem:[#allocation26_spill] sm:$0xff] %v4526_v31  ;;  %v4529_v33 = vadd.f32 %v869_v29, %v4526_v31  ;;  %v4558_v29 = vpack.c.bf16 %v1130_v20, %v1127_v26  ;;  %v4561_v34 = vpack.c.bf16 %v1132_v53, %v1129_v28  ;;  %v1133_v38 = vld [vmem:[#allocation4 + $0x90] sm:$0xff]  ;;  %v4575_v26 = vpack.c.bf16 %v1143_v55, %v1140_v6  ;;  %v1142_v20 = vld [vmem:[#allocation4 + $0xd8] sm:$0xff]  ;;  %v1144_v53 = vld [vmem:[#allocation4 + $0xe8] sm:$0xff] }
 0x26a   :  { %v4568_v5 = vpack.c.bf16 %v1136_v42, %v1133_v38  ;;  %v1141_v28 = vld [vmem:[#allocation4 + $0xd0] sm:$0xff]  ;;  %v4578_v2 = vpack.c.bf16 %v1142_v20, %v1139_v12  ;;  %v1146_v38 = vld [vmem:[#allocation4 + $0xf8] sm:$0xff] }
 0x26b   :  { %993 = vmatmul.mubr.f32.vlgmr.msra.gmra.mrb[16].mxu0 %v4529_v33  ;;  %3124 = vmatmul.mubr.f32.vlgmr.msra.gmra.mrb[16].mxu1 %v4529_v33  ;;  %v4580_v24 = vpack.c.bf16 %v1144_v53, %v1141_v28  ;;  %v1149_v42 = vld [vmem:[#allocation4 + $0x110] sm:$0xff]  ;;  %v1150_v6 = vld [vmem:[#allocation4 + $0x118] sm:$0xff]  ;;  %v1151_v28 = vld [vmem:[#allocation4 + $0x120] sm:$0xff] }
 0x26c   :  { %1227 = vmatprep.mubr.f32.mxu0 %v4884_v40  ;;  %3158 = vmatprep.mubr.msk.f32.mxu1 %vm4062_vm1, %v4884_v40  ;;  %v4583_v27 = vpack.c.bf16 %v1149_v42, %v1146_v38  ;;  %v1148_v40 = vld [vmem:[#allocation4 + $0x108] sm:$0xff]  ;;  %v4590_v12 = vpack.c.bf16 %v1150_v6, %v1147_v0  ;;  %v1154_v53 = vld [vmem:[#allocation4 + $0x138] sm:$0xff]  ;;  %v1153_v38 = vld [vmem:[#allocation4 + $0x130] sm:$0xff]  ;;  %v4906_v42 = vmov 0.0|0.0  }
 0x26d   :  { %3544 = vmatpush1.bf16.msra.mxu0 %v4538_v7  ;;  %3575 = vmatpush3.bf16.msra.mxu1 %v4541_v41  ;;  %v4586_v55 = vpack.c.bf16 %v1148_v40, %v1145_v47  ;;  %v1161_v31 = vld [vmem:[#allocation4 + $0x170] sm:$0xff]  ;;  %v4596_v40 = vpack.c.bf16 %v1154_v53, %v1151_v28  ;;  %v4600_v0 = vpack.c.bf16 %v1156_v23, %v1153_v38  ;;  %v1160_v47 = vld [vmem:[#allocation4 + $0x168] sm:$0xff]  ;;  %v1159_v6 = vld [vmem:[#allocation4 + $0x160] sm:$0xff] }
 0x26e   :  { %3576 = vmatprep.subr.bf16.mxu1 %v4886_v15  ;;  %3546 = vmatprep.subr.bf16.mxu0 %v4545_v19  ;;  %v4610_v28 = vpack.c.bf16 %v1162_v63, %v1159_v6 }
 0x271   :  { %3548 = vmatpush1.bf16.msra.mxu0 %v4548_v50  ;;  %3578 = vmatpush3.bf16.msra.mxu1 %v4551_v52 }
 0x272   :  { %3579 = vmatprep.subr.bf16.mxu1 %v4886_v15  ;;  %3550 = vmatprep.subr.bf16.mxu0 %v4555_v61 }
 0x275   :  { %3552 = vmatpush1.bf16.msra.mxu0 %v4558_v29  ;;  %3581 = vmatpush3.bf16.msra.mxu1 %v4561_v34 }
 0x276   :  { %3582 = vmatprep.subr.bf16.mxu1 %v4886_v15  ;;  %3554 = vmatprep.subr.bf16.mxu0 %v4565_v11 }
 0x279   :  { %3556 = vmatpush1.bf16.msra.mxu0 %v4568_v5  ;;  %3584 = vmatpush3.bf16.msra.mxu1 %v4571_v37 }
 0x27a   :  { %3585 = vmatprep.subr.bf16.mxu1 %v4886_v15  ;;  %3558 = vmatprep.subr.bf16.mxu0 %v4575_v26  ;;  %v1155_v15 = vld [vmem:[#allocation4 + $0x140] sm:$0xff] }
 0x27b   :  { %v4592_v20 = vpack.c.bf16 %v1155_v15, %v1152_v62  ;;  %v4602_v15 = vpack.c.bf16 %v1161_v31, %v1158_v22  ;;  %v1157_v62 = vld [vmem:[#allocation4 + $0x150] sm:$0xff]  ;;  %v267_v31 = vadd.f32 %v4488_v21, %v4394_v10 }
 0x27c   :  { %v4606_v4 = vpack.c.bf16 %v1160_v47, %v1157_v62  ;;  %v269_v62 = vadd.f32 %v4490_v36, %v4396_v14 }
 0x27d   :  { %3560 = vmatpush1.bf16.msra.mxu0 %v4578_v2  ;;  %3587 = vmatpush3.bf16.msra.mxu1 %v4580_v24 }
 0x27e   :  { %3562 = vmatprep.subr.bf16.mxu0 %v4583_v27  ;;  %3588 = vmatprep.subr.bf16.mxu1 %v4906_v42 }
 0x281   :  { %3564 = vmatpush1.bf16.msra.mxu0 %v4586_v55  ;;  %3590 = vmatpush3.bf16.msra.mxu1 %v4590_v12 }
 0x282   :  { %3566 = vmatprep.subr.bf16.mxu0 %v4592_v20  ;;  %3591 = vmatprep.subr.bf16.mxu1 %v4906_v42 }
 0x285   :  { %3568 = vmatpush1.bf16.msra.mxu0 %v4596_v40  ;;  %3593 = vmatpush3.bf16.msra.mxu1 %v4600_v0 }
 0x286   :  { %3570 = vmatprep.subr.bf16.mxu0 %v4602_v15  ;;  %3594 = vmatprep.subr.bf16.mxu1 %v4906_v42 }
 0x289   :  { %3572 = vmatpush1.bf16.msra.mxu0 %v4606_v4  ;;  %3596 = vmatpush3.bf16.msra.mxu1 %v4610_v28 }
 0x28a   :  { %3598 = vmatprep.subr.bf16.mxu0 %v4536_v35  ;;  %3629 = vmatprep.subr.bf16.mxu1 %v4906_v42 }
 0x33e   :  { %v994_v22 = vpop.f32.mrb[16].mxu0  ;;  %v1065_v23 = vpop.f32.mrb[16].mxu1 }
 0x33f   :  { %v995_v53 = vadd.f32 %v994_v22, %v4398_v16  ;;  %v996_v38 = vpop.f32.mrb[17].mxu0  ;;  %v3125_v63 = vpop.f32.mrb[17].mxu1  ;;  %v1066_v22 = vadd.f32 %v1065_v23, %v4408_v46 }
 0x340   :  { %v997_v47 = vadd.f32 %v996_v38, %v4400_v18 }
 0x341   :  { %v1069_v6 = vadd.f32 %v995_v53, %v267_v31 }
 0x342   :  { %v1076_v3 = vadd.f32 %v997_v47, %v269_v62  ;;  %v273_v47 = vadd.f32 %v4496_v54, %v4396_v14 }
 0x343   :  { %v2789_v57 = vmul.f32 -1.442695, %v1069_v6 }
 0x344   :  { %v2790_v9 = vmul.f32 -1.442695, %v1076_v3 }
 0x345   :  { %3921 = vpow2.f32 %v2789_v57 }
 0x346   :  { %3923 = vpow2.f32 %v2790_v9 }
 0x34f   :  { %v3922_v8 = vpop.eup %3921 }
 0x350   :  { %v1073_v48 = vadd.f32 1.0, %v3922_v8  ;;  %v3924_v49 = vpop.eup %3923 }
 0x351   :  { %v1080_v21 = vadd.f32 1.0, %v3924_v49  ;;  %v1104_v49 = vmul.f32 %v4463_v25, %v4529_v33  ;;  %v271_v25 = vadd.f32 %v4492_v43, %v4394_v10 }
 0x352   :  { %3925 = vrcp.f32 %v1073_v48 }
 0x353   :  { %3927 = vrcp.f32 %v1080_v21 }
 0x35c   :  { %v3926_v1 = vpop.eup %3925 }
 0x35d   :  { %v1083_v63 = vmul.f32 %v3926_v1, %v1066_v22  ;;  %v3928_v38 = vpop.eup %3927 }
 0x35e   :  { %v1086_v31 = vsub.f32 1.0, %v3928_v38  ;;  %v1088_v57 = vmul.f32 %v3928_v38, %v4529_v33 }
 0x35f   :  { %v1084_v36 = vadd.f32 %v1083_v63, %v4364_v44  ;;  %v4907_v44 = vmov 0.0  }
 0x361   :  { %3929 = vtanh.f32 %v1084_v36 }
 0x36b   :  { %v3930_v53 = vpop.eup %3929 }
 0x36c   :  { %v1087_v3 = vmul.f32 %v3930_v53, %v1086_v31 }
 0x36e   :  { %v1089_v9 = vadd.f32 %v1088_v57, %v1087_v3 }
 0x370   :  { %v4627_v8 = vmul.f32 %v4457_v17, %v1089_v9 }
 0x372   :  { %v4632_v48 = vadd.f32 %v1104_v49, %v4627_v8 }
 0x374   :  { %1228 = vmatmul.mubr.f32.vlgmr.msra.gmra.mrb[18].mxu0 %v4632_v48  ;;  %3159 = vmatmul.mubr.f32.vlgmr.msra.gmra.mrb[18].mxu1 %v4632_v48 }
 0x375   :  { %3600 = vmatpush1.bf16.msra.mxu0 %v4538_v7  ;;  %3631 = vmatpush3.bf16.msra.mxu1 %v4541_v41 }
 0x376   :  { %3602 = vmatprep.subr.bf16.mxu0 %v4545_v19  ;;  %3632 = vmatprep.subr.bf16.mxu1 %v4906_v42 }
 0x377   :  { %1462 = vmatprep.mubr.f32.mxu0 %v4907_v44  ;;  %3193 = vmatprep.mubr.msk.f32.mxu1 %vm4062_vm1, %v4907_v44 }
 0x379   :  { %3604 = vmatpush1.bf16.msra.mxu0 %v4548_v50  ;;  %3634 = vmatpush3.bf16.msra.mxu1 %v4551_v52 }
 0x37a   :  { %3606 = vmatprep.subr.bf16.mxu0 %v4555_v61  ;;  %3635 = vmatprep.subr.bf16.mxu1 %v4906_v42 }
 0x37d   :  { %3608 = vmatpush1.bf16.msra.mxu0 %v4558_v29  ;;  %3637 = vmatpush3.bf16.msra.mxu1 %v4561_v34 }
 0x37e   :  { %3610 = vmatprep.subr.bf16.mxu0 %v4565_v11  ;;  %3638 = vmatprep.subr.bf16.mxu1 %v4906_v42 }
 0x381   :  { %3612 = vmatpush1.bf16.msra.mxu0 %v4568_v5  ;;  %3640 = vmatpush3.bf16.msra.mxu1 %v4571_v37 }
 0x382   :  { %3614 = vmatprep.subr.bf16.mxu0 %v4575_v26  ;;  %3641 = vmatprep.subr.bf16.mxu1 %v4906_v42 }
 0x385   :  { %3616 = vmatpush1.bf16.msra.mxu0 %v4578_v2  ;;  %3643 = vmatpush3.bf16.msra.mxu1 %v4580_v24 }
 0x386   :  { %3618 = vmatprep.subr.bf16.mxu0 %v4583_v27  ;;  %3644 = vmatprep.subr.bf16.mxu1 %v4906_v42 }
 0x389   :  { %3620 = vmatpush1.bf16.msra.mxu0 %v4586_v55  ;;  %3646 = vmatpush3.bf16.msra.mxu1 %v4590_v12 }
 0x38a   :  { %3622 = vmatprep.subr.bf16.mxu0 %v4592_v20  ;;  %3647 = vmatprep.subr.bf16.mxu1 %v4906_v42 }
 0x38d   :  { %3624 = vmatpush1.bf16.msra.mxu0 %v4596_v40  ;;  %3649 = vmatpush3.bf16.msra.mxu1 %v4600_v0 }
 0x38e   :  { %3626 = vmatprep.subr.bf16.mxu0 %v4602_v15  ;;  %3650 = vmatprep.subr.bf16.mxu1 %v4906_v42 }
 0x391   :  { %3628 = vmatpush1.bf16.msra.mxu0 %v4606_v4  ;;  %3652 = vmatpush3.bf16.msra.mxu1 %v4610_v28 }
 0x392   :  { %3654 = vmatprep.subr.bf16.mxu0 %v4536_v35  ;;  %3685 = vmatprep.subr.bf16.mxu1 %v4906_v42 }
 0x447   :  { %v1229_v1 = vpop.f32.mrb[18].mxu0  ;;  %v1300_v17 = vpop.f32.mrb[18].mxu1 }
 0x448   :  { %v1230_v33 = vadd.f32 %v1229_v1, %v4398_v16  ;;  %v1231_v23 = vpop.f32.mrb[19].mxu0  ;;  %v3160_v62 = vpop.f32.mrb[19].mxu1  ;;  %v1301_v57 = vadd.f32 %v1300_v17, %v4408_v46 }
 0x449   :  { %v1232_v6 = vadd.f32 %v1231_v23, %v4400_v18 }
 0x44a   :  { %v1304_v21 = vadd.f32 %v1230_v33, %v271_v25 }
 0x44b   :  { %v1311_v22 = vadd.f32 %v1232_v6, %v273_v47  ;;  %v1339_v6 = vmul.f32 %v4467_v30, %v4632_v48  ;;  %v277_v30 = vadd.f32 %v4498_v56, %v4394_v10 }
 0x44c   :  { %v2792_v63 = vmul.f32 -1.442695, %v1304_v21 }
 0x44d   :  { %v2793_v36 = vmul.f32 -1.442695, %v1311_v22 }
 0x44e   :  { %3931 = vpow2.f32 %v2792_v63  ;;  %v279_v63 = vadd.f32 %v4500_v58, %v4396_v14 }
 0x44f   :  { %3933 = vpow2.f32 %v2793_v36 }
 0x458   :  { %v3932_v38 = vpop.eup %3931 }
 0x459   :  { %v1308_v31 = vadd.f32 1.0, %v3932_v38  ;;  %v3934_v53 = vpop.eup %3933 }
 0x45a   :  { %v1315_v43 = vadd.f32 1.0, %v3934_v53 }
 0x45b   :  { %3935 = vrcp.f32 %v1308_v31 }
 0x45c   :  { %3937 = vrcp.f32 %v1315_v43 }
 0x465   :  { %v3936_v3 = vpop.eup %3935 }
 0x466   :  { %v1318_v9 = vmul.f32 %v3936_v3, %v1301_v57  ;;  %v3938_v49 = vpop.eup %3937 }
 0x467   :  { %v1321_v1 = vsub.f32 1.0, %v3938_v49  ;;  %v1323_v33 = vmul.f32 %v3938_v49, %v4632_v48 }
 0x468   :  { %v1319_v54 = vadd.f32 %v1318_v9, %v4367_v51 }
 0x46a   :  { %3939 = vtanh.f32 %v1319_v54 }
 0x474   :  { %v3940_v25 = vpop.eup %3939 }
 0x475   :  { %v1322_v23 = vmul.f32 %v3940_v25, %v1321_v1 }
 0x477   :  { %v1324_v62 = vadd.f32 %v1323_v33, %v1322_v23 }
 0x479   :  { %v4681_v47 = vmul.f32 %v4461_v32, %v1324_v62 }
 0x47b   :  { %v4686_v17 = vadd.f32 %v1339_v6, %v4681_v47 }
 0x47d   :  { %1463 = vmatmul.mubr.f32.vlgmr.msra.gmra.mrb[20].mxu0 %v4686_v17  ;;  %3194 = vmatmul.mubr.f32.vlgmr.msra.gmra.mrb[20].mxu1 %v4686_v17 }
 0x47e   :  { %3656 = vmatpush1.bf16.msra.mxu0 %v4538_v7  ;;  %3687 = vmatpush3.bf16.msra.mxu1 %v4541_v41 }
 0x47f   :  { %3658 = vmatprep.subr.bf16.mxu0 %v4545_v19  ;;  %3688 = vmatprep.subr.bf16.mxu1 %v4906_v42 }
 0x480   :  { %1697 = vmatprep.mubr.f32.mxu0 %v4907_v44  ;;  %3228 = vmatprep.mubr.msk.f32.mxu1 %vm4062_vm1, %v4907_v44 }
 0x482   :  { %3660 = vmatpush1.bf16.msra.mxu0 %v4548_v50  ;;  %3690 = vmatpush3.bf16.msra.mxu1 %v4551_v52 }
 0x483   :  { %3662 = vmatprep.subr.bf16.mxu0 %v4555_v61  ;;  %3691 = vmatprep.subr.bf16.mxu1 %v4906_v42 }
 0x486   :  { %3664 = vmatpush1.bf16.msra.mxu0 %v4558_v29  ;;  %3693 = vmatpush3.bf16.msra.mxu1 %v4561_v34 }
 0x487   :  { %3666 = vmatprep.subr.bf16.mxu0 %v4565_v11  ;;  %3694 = vmatprep.subr.bf16.mxu1 %v4906_v42 }
 0x48a   :  { %3668 = vmatpush1.bf16.msra.mxu0 %v4568_v5  ;;  %3696 = vmatpush3.bf16.msra.mxu1 %v4571_v37 }
 0x48b   :  { %3670 = vmatprep.subr.bf16.mxu0 %v4575_v26  ;;  %3697 = vmatprep.subr.bf16.mxu1 %v4906_v42 }
 0x48e   :  { %3672 = vmatpush1.bf16.msra.mxu0 %v4578_v2  ;;  %3699 = vmatpush3.bf16.msra.mxu1 %v4580_v24 }
 0x48f   :  { %3674 = vmatprep.subr.bf16.mxu0 %v4583_v27  ;;  %3700 = vmatprep.subr.bf16.mxu1 %v4906_v42 }
 0x492   :  { %3676 = vmatpush1.bf16.msra.mxu0 %v4586_v55  ;;  %3702 = vmatpush3.bf16.msra.mxu1 %v4590_v12 }
 0x493   :  { %3678 = vmatprep.subr.bf16.mxu0 %v4592_v20  ;;  %3703 = vmatprep.subr.bf16.mxu1 %v4906_v42 }
 0x496   :  { %3680 = vmatpush1.bf16.msra.mxu0 %v4596_v40  ;;  %3705 = vmatpush3.bf16.msra.mxu1 %v4600_v0 }
 0x497   :  { %3682 = vmatprep.subr.bf16.mxu0 %v4602_v15  ;;  %3706 = vmatprep.subr.bf16.mxu1 %v4906_v42 }
 0x49a   :  { %3684 = vmatpush1.bf16.msra.mxu0 %v4606_v4  ;;  %3708 = vmatpush3.bf16.msra.mxu1 %v4610_v28 }
 0x49b   :  { %3710 = vmatprep.subr.bf16.mxu0 %v4536_v35  ;;  %3741 = vmatprep.subr.bf16.mxu1 %v4906_v42 }
 0x550   :  { %v1464_v51 = vpop.f32.mrb[20].mxu0  ;;  %v1535_v32 = vpop.f32.mrb[20].mxu1 }
 0x551   :  { %v1465_v48 = vadd.f32 %v1464_v51, %v4398_v16  ;;  %v1466_v21 = vpop.f32.mrb[21].mxu0  ;;  %v3195_v22 = vpop.f32.mrb[21].mxu1  ;;  %v1536_v9 = vadd.f32 %v1535_v32, %v4408_v46 }
 0x552   :  { %v1467_v36 = vadd.f32 %v1466_v21, %v4400_v18 }
 0x553   :  { %v1539_v38 = vadd.f32 %v1465_v48, %v277_v30  ;;  %v1574_v30 = vmul.f32 %v4469_v45, %v4686_v17  ;;  %v281_v45 = vadd.f32 %v4502_v13, %v4394_v10  ;;  %v4910_v48 = vld [vmem:[#allocation18_spill] sm:$0xff] }
 0x554   :  { %v1546_v31 = vadd.f32 %v1467_v36, %v279_v63  ;;  %v2056_v63 = vld [vmem:[#allocation4 + $0x8] sm:$0xff]  ;;  %v2059_v36 = vld [vmem:[#allocation4 + $0x20] sm:$0xff] }
 0x555   :  { %v2795_v53 = vmul.f32 -1.442695, %v1539_v38  ;;  %v3765_v38 = vpack.c.bf16 %v2059_v36, %v2056_v63  ;;  %v2090_v63 = vld [vmem:[#allocation4 + $0x118] sm:$0xff]  ;;  %v2092_v36 = vld [vmem:[#allocation4 + $0x128] sm:$0xff] }
 0x556   :  { %v2796_v35 = vmul.f32 -1.442695, %v1546_v31  ;;  %v2055_v31 = vld [vmem:[#allocation4] sm:$0xff] }
 0x557   :  { %3941 = vpow2.f32 %v2795_v53  ;;  %v2058_v53 = vld [vmem:[#allocation4 + $0x18] sm:$0xff] }
 0x558   :  { %3943 = vpow2.f32 %v2796_v35  ;;  %v3767_v35 = vpack.c.bf16 %v2058_v53, %v2055_v31 }
 0x561   :  { %v3942_v43 = vpop.eup %3941 }
 0x562   :  { %v1543_v57 = vadd.f32 1.0, %v3942_v43  ;;  %v3944_v3 = vpop.eup %3943  ;;  %v2057_v43 = vld [vmem:[#allocation4 + $0x10] sm:$0xff] }
 0x563   :  { %v1550_v56 = vadd.f32 1.0, %v3944_v3 }
 0x564   :  { %3945 = vrcp.f32 %v1543_v57  ;;  %v2060_v57 = vld [vmem:[#allocation4 + $0x28] sm:$0xff] }
 0x565   :  { %3947 = vrcp.f32 %v1550_v56  ;;  %v3798_v3 = vpack.c.bf16 %v2060_v57, %v2057_v43  ;;  %v2062_v56 = vld [vmem:[#allocation4 + $0x38] sm:$0xff]  ;;  %v2093_v57 = vld [vmem:[#allocation4 + $0x130] sm:$0xff] }
 0x566   :  { %v2094_v43 = vld [vmem:[#allocation4 + $0x138] sm:$0xff] }
 0x56e   :  { %v3946_v54 = vpop.eup %3945 }
 0x56f   :  { %v1553_v49 = vmul.f32 %v3946_v54, %v1536_v9  ;;  %v3948_v1 = vpop.eup %3947  ;;  %v2065_v9 = vld [vmem:[#allocation4 + $0x50] sm:$0xff] }
 0x570   :  { %v1556_v25 = vsub.f32 1.0, %v3948_v1  ;;  %v1558_v23 = vmul.f32 %v3948_v1, %v4686_v17  ;;  %v3769_v54 = vpack.c.bf16 %v2065_v9, %v2062_v56  ;;  %v2098_v56 = vld [vmem:[#allocation4 + $0x158] sm:$0xff]  ;;  %v2101_v9 = vld [vmem:[#allocation4 + $0x170] sm:$0xff] }
 0x571   :  { %v1554_v58 = vadd.f32 %v1553_v49, %v4376_v60  ;;  %v2061_v49 = vld [vmem:[#allocation4 + $0x30] sm:$0xff] }
 0x573   :  { %3949 = vtanh.f32 %v1554_v58  ;;  %v2064_v58 = vld [vmem:[#allocation4 + $0x48] sm:$0xff] }
 0x574   :  { %v3771_v1 = vpack.c.bf16 %v2064_v58, %v2061_v49  ;;  %v3793_v58 = vpack.c.bf16 %v2101_v9, %v2098_v56  ;;  %v3883_v56 = vld [vmem:[#allocation7 + $0x70] sm:$0xff]   ;;  %v3884_v9 = vld [vmem:[#allocation7 + $0x78] sm:$0xff]  }
 0x57d   :  { %v3950_v33 = vpop.eup %3949 }
 0x57e   :  { %v1557_v62 = vmul.f32 %v3950_v33, %v1556_v25  ;;  %v2063_v25 = vld [vmem:[#allocation4 + $0x40] sm:$0xff]  ;;  %v2066_v33 = vld [vmem:[#allocation4 + $0x58] sm:$0xff] }
 0x580   :  { %v1559_v6 = vadd.f32 %v1558_v23, %v1557_v62  ;;  %v3801_v23 = vpack.c.bf16 %v2066_v33, %v2063_v25  ;;  %v2068_v62 = vld [vmem:[#allocation4 + $0x68] sm:$0xff]  ;;  %v2099_v33 = vld [vmem:[#allocation4 + $0x160] sm:$0xff] }
 0x581   :  { %v2100_v25 = vld [vmem:[#allocation4 + $0x168] sm:$0xff] }
 0x582   :  { %v4735_v51 = vmul.f32 %v4465_v39, %v1559_v6  ;;  %v2071_v6 = vld [vmem:[#allocation4 + $0x80] sm:$0xff] }
 0x584   :  { %v4740_v32 = vadd.f32 %v1574_v30, %v4735_v51  ;;  %v3773_v30 = vpack.c.bf16 %v2071_v6, %v2068_v62 }
 0x586   :  { %1698 = vmatmul.mubr.f32.vlgmr.msra.gmra.mrb[22].mxu0 %v4740_v32  ;;  %3229 = vmatmul.mubr.f32.vlgmr.msra.gmra.mrb[22].mxu1 %v4740_v32  ;;  %v1809_v21 = vmul.f32 %v4910_v48, %v4740_v32  ;;  %v2087_v48 = vld [vmem:[#allocation4 + $0x100] sm:$0xff] }
 0x587   :  { %3712 = vmatpush1.bf16.msra.mxu0 %v4538_v7  ;;  %3743 = vmatpush3.bf16.msra.mxu1 %v4541_v41  ;;  %v3813_v31 = vpack.c.bf16 %v2090_v63, %v2087_v48 }
 0x588   :  { %3714 = vmatprep.subr.bf16.mxu0 %v4545_v19  ;;  %3744 = vmatprep.subr.bf16.mxu1 %v4906_v42 }
 0x589   :  { %1932 = vmatprep.mubr.f32.mxu0 %v4907_v44  ;;  %3263 = vmatprep.mubr.msk.f32.mxu1 %vm4062_vm1, %v4907_v44 }
 0x58b   :  { %3716 = vmatpush1.bf16.msra.mxu0 %v4548_v50  ;;  %3746 = vmatpush3.bf16.msra.mxu1 %v4551_v52  ;;  %v283_v50 = vadd.f32 %v4504_v59, %v4396_v14 }
 0x58c   :  { %3718 = vmatprep.subr.bf16.mxu0 %v4555_v61  ;;  %3747 = vmatprep.subr.bf16.mxu1 %v4906_v42 }
 0x58f   :  { %3720 = vmatpush1.bf16.msra.mxu0 %v4558_v29  ;;  %3749 = vmatpush3.bf16.msra.mxu1 %v4561_v34 }
 0x590   :  { %3722 = vmatprep.subr.bf16.mxu0 %v4565_v11  ;;  %3750 = vmatprep.subr.bf16.mxu1 %v4906_v42 }
 0x593   :  { %3724 = vmatpush1.bf16.msra.mxu0 %v4568_v5  ;;  %3752 = vmatpush3.bf16.msra.mxu1 %v4571_v37 }
 0x594   :  { %3726 = vmatprep.subr.bf16.mxu0 %v4575_v26  ;;  %3753 = vmatprep.subr.bf16.mxu1 %v4906_v42 }
 0x597   :  { %3728 = vmatpush1.bf16.msra.mxu0 %v4578_v2  ;;  %3755 = vmatpush3.bf16.msra.mxu1 %v4580_v24 }
 0x598   :  { %3730 = vmatprep.subr.bf16.mxu0 %v4583_v27  ;;  %3756 = vmatprep.subr.bf16.mxu1 %v4906_v42  ;;  %v4908_v27 = vld [vmem:[#allocation15_spill] sm:$0xff] }
 0x59b   :  { %3732 = vmatpush1.bf16.msra.mxu0 %v4586_v55  ;;  %3758 = vmatpush3.bf16.msra.mxu1 %v4590_v12 }
 0x59c   :  { %3734 = vmatprep.subr.bf16.mxu0 %v4592_v20  ;;  %3759 = vmatprep.subr.bf16.mxu1 %v4906_v42 }
 0x59f   :  { %3736 = vmatpush1.bf16.msra.mxu0 %v4596_v40  ;;  %3761 = vmatpush3.bf16.msra.mxu1 %v4600_v0 }
 0x5a0   :  { %3738 = vmatprep.subr.bf16.mxu0 %v4602_v15  ;;  %3762 = vmatprep.subr.bf16.mxu1 %v4906_v42 }
 0x5a3   :  { %3740 = vmatpush1.bf16.msra.mxu0 %v4606_v4  ;;  %3764 = vmatpush3.bf16.msra.mxu1 %v4610_v28  ;;  %v4909_v28 = vld [vmem:[#allocation17_spill] sm:$0xff] }
 0x5a4   :  { %3797 = vmatprep.subr.bf16.mxu1 %v4906_v42  ;;  %3766 = vmatprep.subr.bf16.mxu0 %v3765_v38  ;;  %v2095_v38 = vld [vmem:[#allocation4 + $0x140] sm:$0xff] }
 0x5a5   :  { %v3789_v53 = vpack.c.bf16 %v2095_v38, %v2092_v36  ;;  %v3878_v38 = vld [vmem:[#allocation7 + $0x48] sm:$0xff]  }
 0x659   :  { %v1699_v60 = vpop.f32.mrb[22].mxu0  ;;  %v1770_v39 = vpop.f32.mrb[22].mxu1 }
 0x65a   :  { %v1700_v7 = vadd.f32 %v1699_v60, %v4398_v16  ;;  %v1701_v41 = vpop.f32.mrb[23].mxu0  ;;  %v3230_v19 = vpop.f32.mrb[23].mxu1  ;;  %v1771_v26 = vadd.f32 %v1770_v39, %v4408_v46  ;;  %v2070_v60 = vld [vmem:[#allocation4 + $0x78] sm:$0xff] }
 0x65b   :  { %v1702_v52 = vadd.f32 %v1701_v41, %v4400_v18  ;;  %v2074_v19 = vld [vmem:[#allocation4 + $0x98] sm:$0xff] }
 0x65c   :  { %v1774_v61 = vadd.f32 %v1700_v7, %v281_v45  ;;  %v2069_v45 = vld [vmem:[#allocation4 + $0x70] sm:$0xff]  ;;  %v2072_v7 = vld [vmem:[#allocation4 + $0x88] sm:$0xff] }
 0x65d   :  { %v1781_v4 = vadd.f32 %v1702_v52, %v283_v50  ;;  %v3804_v41 = vpack.c.bf16 %v2072_v7, %v2069_v45  ;;  %v2077_v50 = vld [vmem:[#allocation4 + $0xb0] sm:$0xff] }
 0x65e   :  { %v2798_v29 = vmul.f32 -1.442695, %v1774_v61  ;;  %v3777_v52 = vpack.c.bf16 %v2077_v50, %v2074_v19  ;;  %v2073_v61 = vld [vmem:[#allocation4 + $0x90] sm:$0xff]  ;;  %v4912_v50 = vld [vmem:[#allocation23_spill] sm:$0xff] }
 0x65f   :  { %v2799_v34 = vmul.f32 -1.442695, %v1781_v4  ;;  %v2076_v4 = vld [vmem:[#allocation4 + $0xa8] sm:$0xff] }
 0x660   :  { %3951 = vpow2.f32 %v2798_v29  ;;  %v3779_v29 = vpack.c.bf16 %v2076_v4, %v2073_v61 }
 0x661   :  { %3953 = vpow2.f32 %v2799_v34  ;;  %v2075_v34 = vld [vmem:[#allocation4 + $0xa0] sm:$0xff] }
 0x66a   :  { %v3952_v11 = vpop.eup %3951 }
 0x66b   :  { %v1778_v5 = vadd.f32 1.0, %v3952_v11  ;;  %v3954_v37 = vpop.eup %3953  ;;  %v2078_v11 = vld [vmem:[#allocation4 + $0xb8] sm:$0xff] }
 0x66c   :  { %v1785_v13 = vadd.f32 1.0, %v3954_v37  ;;  %v2080_v37 = vld [vmem:[#allocation4 + $0xc8] sm:$0xff] }
 0x66d   :  { %3955 = vrcp.f32 %v1778_v5  ;;  %v3807_v5 = vpack.c.bf16 %v2078_v11, %v2075_v34 }
 0x66e   :  { %3957 = vrcp.f32 %v1785_v13  ;;  %v2083_v13 = vld [vmem:[#allocation4 + $0xe0] sm:$0xff] }
 0x677   :  { %v3956_v2 = vpop.eup %3955 }
 0x678   :  { %v1788_v24 = vmul.f32 %v3956_v2, %v1771_v26  ;;  %v3958_v55 = vpop.eup %3957  ;;  %v3781_v26 = vpack.c.bf16 %v2083_v13, %v2080_v37  ;;  %v2079_v2 = vld [vmem:[#allocation4 + $0xc0] sm:$0xff] }
 0x679   :  { %v1791_v12 = vsub.f32 1.0, %v3958_v55  ;;  %v1793_v40 = vmul.f32 %v3958_v55, %v4740_v32  ;;  %v2067_v32 = vld [vmem:[#allocation4 + $0x60] sm:$0xff]  ;;  %v2084_v55 = vld [vmem:[#allocation4 + $0xe8] sm:$0xff] }
 0x67a   :  { %v1789_v59 = vadd.f32 %v1788_v24, %v4908_v27  ;;  %v3775_v39 = vpack.c.bf16 %v2070_v60, %v2067_v32  ;;  %v2082_v24 = vld [vmem:[#allocation4 + $0xd8] sm:$0xff]  ;;  %v2081_v27 = vld [vmem:[#allocation4 + $0xd0] sm:$0xff] }
 0x67c   :  { %3959 = vtanh.f32 %v1789_v59  ;;  %v3783_v59 = vpack.c.bf16 %v2082_v24, %v2079_v2 }
 0x686   :  { %v3960_v20 = vpop.eup %3959 }
 0x687   :  { %v1792_v0 = vmul.f32 %v3960_v20, %v1791_v12  ;;  %v2086_v12 = vld [vmem:[#allocation4 + $0xf8] sm:$0xff]  ;;  %v2089_v20 = vld [vmem:[#allocation4 + $0x110] sm:$0xff] }
 0x689   :  { %v1794_v15 = vadd.f32 %v1793_v40, %v1792_v0  ;;  %v3810_v40 = vpack.c.bf16 %v2084_v55, %v2081_v27  ;;  %v3785_v0 = vpack.c.bf16 %v2089_v20, %v2086_v12  ;;  %v4913_v27 = vld [vmem:[#allocation13_spill] sm:$0xff] }
 0x68b   :  { %v4788_v17 = vmul.f32 %v4909_v28, %v1794_v15  ;;  %v2085_v15 = vld [vmem:[#allocation4 + $0xf0] sm:$0xff]  ;;  %v2088_v28 = vld [vmem:[#allocation4 + $0x108] sm:$0xff] }
 0x68d   :  { %v4793_v22 = vadd.f32 %v1809_v21, %v4788_v17  ;;  %v3787_v21 = vpack.c.bf16 %v2088_v28, %v2085_v15  ;;  %v4914_v28 = vld [vmem:[#allocation19_spill] sm:$0xff] }
 0x68f   :  { %1933 = vmatmul.mubr.f32.vlgmr.msra.gmra.mrb[24].mxu0 %v4793_v22  ;;  %3264 = vmatmul.mubr.f32.vlgmr.msra.gmra.mrb[24].mxu1 %v4793_v22 }
 0x690   :  { %2167 = vmatprep.mubr.f32.mxu0 %v4907_v44  ;;  %3298 = vmatprep.mubr.msk.f32.mxu1 %vm4062_vm1, %v4907_v44 }
 0x691   :  { %3768 = vmatpush1.bf16.msra.mxu0 %v3767_v35  ;;  %3799 = vmatpush3.bf16.msra.mxu1 %v3798_v3  ;;  %v2091_v35 = vld [vmem:[#allocation4 + $0x120] sm:$0xff]  ;;  %v2096_v3 = vld [vmem:[#allocation4 + $0x148] sm:$0xff] }
 0x692   :  { %3800 = vmatprep.subr.bf16.mxu1 %v4906_v42  ;;  %3770 = vmatprep.subr.bf16.mxu0 %v3769_v54  ;;  %v3791_v54 = vpack.c.bf16 %v2094_v43, %v2091_v35  ;;  %v3816_v49 = vpack.c.bf16 %v2096_v3, %v2093_v57  ;;  %v3879_v43 = vld [vmem:[#allocation7 + $0x50] sm:$0xff]   ;;  %v3880_v57 = vld [vmem:[#allocation7 + $0x58] sm:$0xff]   ;;  %v3882_v3 = vld [vmem:[#allocation7 + $0x68] sm:$0xff]  }
 0x695   :  { %3772 = vmatpush1.bf16.msra.mxu0 %v3771_v1  ;;  %3802 = vmatpush3.bf16.msra.mxu1 %v3801_v23  ;;  %v2097_v1 = vld [vmem:[#allocation4 + $0x150] sm:$0xff]  ;;  %v2102_v23 = vld [vmem:[#allocation4 + $0x178] sm:$0xff] }
 0x696   :  { %3803 = vmatprep.subr.bf16.mxu1 %v4906_v42  ;;  %3774 = vmatprep.subr.bf16.mxu0 %v3773_v30  ;;  %v3795_v62 = vpack.c.bf16 %v2100_v25, %v2097_v1  ;;  %v3819_v6 = vpack.c.bf16 %v2102_v23, %v2099_v33  ;;  %v3877_v30 = vld [vmem:[#allocation7 + $0x40] sm:$0xff]   ;;  %v3886_v1 = vld [vmem:[#allocation7 + $0x8] sm:$0xff]   ;;  %v3887_v25 = vld [vmem:[#allocation7 + $0x10] sm:$0xff]  }
 0x697   :  { %v3888_v33 = vld [vmem:[#allocation7 + $0x18] sm:$0xff]   ;;  %v3889_v23 = vld [vmem:[#allocation7 + $0x20] sm:$0xff]  }
 0x699   :  { %3776 = vmatpush1.bf16.msra.mxu0 %v3775_v39  ;;  %3805 = vmatpush3.bf16.msra.mxu1 %v3804_v41  ;;  %v4911_v39 = vld [vmem:[#allocation22_spill] sm:$0xff] }
 0x69a   :  { %3806 = vmatprep.subr.bf16.mxu1 %v4906_v42  ;;  %3778 = vmatprep.subr.bf16.mxu0 %v3777_v52  ;;  %v287_v45 = vadd.f32 %v4911_v39, %v4394_v10  ;;  %v289_v52 = vadd.f32 %v4912_v50, %v4396_v14 }
 0x69d   :  { %3780 = vmatpush1.bf16.msra.mxu0 %v3779_v29  ;;  %3808 = vmatpush3.bf16.msra.mxu1 %v3807_v5 }
 0x69e   :  { %3809 = vmatprep.subr.bf16.mxu1 %v4906_v42  ;;  %3782 = vmatprep.subr.bf16.mxu0 %v3781_v26 }
 0x6a1   :  { %3784 = vmatpush1.bf16.msra.mxu0 %v3783_v59  ;;  %3811 = vmatpush3.bf16.msra.mxu1 %v3810_v40 }
 0x6a2   :  { %3786 = vmatprep.subr.bf16.mxu0 %v3785_v0  ;;  %3812 = vmatprep.subr.bf16.mxu1 %v4906_v42 }
 0x6a5   :  { %3788 = vmatpush1.bf16.msra.mxu0 %v3787_v21  ;;  %3814 = vmatpush3.bf16.msra.mxu1 %v3813_v31  ;;  %v4915_v21 = vld [vmem:[#allocation20_spill] sm:$0xff] }
 0x6a6   :  { %3790 = vmatprep.subr.bf16.mxu0 %v3789_v53  ;;  %3815 = vmatprep.subr.bf16.mxu1 %v4906_v42  ;;  %v2044_v63 = vmul.f32 %v4915_v21, %v4793_v22  ;;  %v4916_v31 = vld [vmem:[#allocation16_spill] sm:$0xff]  ;;  %v4917_v53 = vld [vmem:[#allocation26_spill] sm:$0xff]  ;;  %v4921_v21 = vld [vmem:[#allocation21_spill] sm:$0xff] }
 0x6a7   :  { %v2306_v35 = vpack.c.bf16 %v4917_v53, %v4916_v31 }
 0x6a9   :  { %3792 = vmatpush1.bf16.msra.mxu0 %v3791_v54  ;;  %3817 = vmatpush3.bf16.msra.mxu1 %v3816_v49  ;;  %v2307_v54 = vpack.c.bf16 %v4681_v47, %v4627_v8  ;;  %v2308_v49 = vpack.c.bf16 %v4788_v17, %v4735_v51 }
 0x6aa   :  { %3794 = vmatprep.subr.bf16.mxu0 %v3793_v58  ;;  %3818 = vmatprep.subr.bf16.mxu1 %v4906_v42  ;;  %v3885_v58 = vld [vmem:[#allocation7] sm:$0xff]  }
 0x6ad   :  { %3796 = vmatpush1.bf16.msra.mxu0 %v3795_v62  ;;  %3820 = vmatpush3.bf16.msra.mxu1 %v3819_v6  ;;  %v3890_v62 = vld [vmem:[#allocation7 + $0x28] sm:$0xff]   ;;  %v3891_v6 = vld [vmem:[#allocation7 + $0x30] sm:$0xff]  }
 0x6ae   :  { %3301 = vmatprep.subr.bf16.mxu0 %v3877_v30 }
 0x762   :  { %v1934_v32 = vpop.f32.mrb[24].mxu0  ;;  %v2005_v60 = vpop.f32.mrb[24].mxu1 }
 0x763   :  { %v1935_v7 = vadd.f32 %v1934_v32, %v4398_v16  ;;  %v1936_v41 = vpop.f32.mrb[25].mxu0  ;;  %v3265_v19 = vpop.f32.mrb[25].mxu1  ;;  %v2006_v26 = vadd.f32 %v2005_v60, %v4408_v46  ;;  %v3893_v32 = vld [vmem:[#allocation7 + $0x80] sm:$0xff]  }
 0x764   :  { %v1937_v61 = vadd.f32 %v1936_v41, %v4400_v18 }
 0x765   :  { %v2009_v4 = vadd.f32 %v1935_v7, %v287_v45  ;;  %v4918_v45 = vld [vmem:[#allocation24_spill] sm:$0xff] }
 0x766   :  { %v2016_v29 = vadd.f32 %v1937_v61, %v289_v52  ;;  %v291_v7 = vadd.f32 %v4918_v45, %v4394_v10  ;;  %v4919_v52 = vld [vmem:[#allocation25_spill] sm:$0xff] }
 0x767   :  { %v2801_v42 = vmul.f32 -1.442695, %v2009_v4  ;;  %v293_v61 = vadd.f32 %v4919_v52, %v4396_v14 }
 0x768   :  { %v2802_v34 = vmul.f32 -1.442695, %v2016_v29 }
 0x769   :  { %3961 = vpow2.f32 %v2801_v42 }
 0x76a   :  { %3963 = vpow2.f32 %v2802_v34 }
 0x773   :  { %v3962_v11 = vpop.eup %3961 }
 0x774   :  { %v2013_v5 = vadd.f32 1.0, %v3962_v11  ;;  %v3964_v37 = vpop.eup %3963 }
 0x775   :  { %v2020_v13 = vadd.f32 1.0, %v3964_v37 }
 0x776   :  { %3965 = vrcp.f32 %v2013_v5 }
 0x777   :  { %3967 = vrcp.f32 %v2020_v13 }
 0x780   :  { %v3966_v2 = vpop.eup %3965 }
 0x781   :  { %v2023_v24 = vmul.f32 %v3966_v2, %v2006_v26  ;;  %v3968_v55 = vpop.eup %3967 }
 0x782   :  { %v2026_v12 = vsub.f32 1.0, %v3968_v55  ;;  %v2028_v40 = vmul.f32 %v3968_v55, %v4793_v22  ;;  %v3881_v22 = vld [vmem:[#allocation7 + $0x60] sm:$0xff]  }
 0x783   :  { %v2024_v59 = vadd.f32 %v2023_v24, %v4913_v27  ;;  %v4920_v24 = vld [vmem:[#allocation14_spill] sm:$0xff] }
 0x785   :  { %3969 = vtanh.f32 %v2024_v59 }
 0x78f   :  { %v3970_v20 = vpop.eup %3969 }
 0x790   :  { %v2027_v0 = vmul.f32 %v3970_v20, %v2026_v12 }
 0x792   :  { %v2029_v15 = vadd.f32 %v2028_v40, %v2027_v0 }
 0x794   :  { %v4817_v48 = vmul.f32 %v4914_v28, %v2029_v15 }
 0x796   :  { %v4822_v36 = vadd.f32 %v2044_v63, %v4817_v48 }
 0x798   :  { %2168 = vmatmul.mubr.f32.vlgmr.msra.gmra.mrb[26].mxu0 %v4822_v36  ;;  %3299 = vmatmul.mubr.f32.vlgmr.msra.gmra.mrb[26].mxu1 %v4822_v36 }
 0x799   :  { %3302 = vmatpush3.bf16.msra.mxu0 %v3877_v30  ;;  %3317 = vmatprep.mubr.bf16.mxu0 %v2306_v35  ;;  %v3892_v30 = vld [vmem:[#allocation7 + $0x38] sm:$0xff]  }
 0x79a   :  { %3303 = vmatprep.subr.bf16.mxu0 %v3878_v38 }
 0x79d   :  { %3304 = vmatpush3.bf16.msra.mxu0 %v3878_v38 }
 0x79e   :  { %3305 = vmatprep.subr.bf16.mxu0 %v3879_v43 }
 0x7a1   :  { %3306 = vmatpush3.bf16.msra.mxu0 %v3879_v43 }
 0x7a2   :  { %3307 = vmatprep.subr.bf16.mxu0 %v3880_v57 }
 0x7a5   :  { %3308 = vmatpush3.bf16.msra.mxu0 %v3880_v57  ;;  %v2285_v57 = vpack.c.bf16 %v4916_v31, %v4907_v44 }
 0x7a6   :  { %3309 = vmatprep.subr.bf16.mxu0 %v3881_v22 }
 0x7a9   :  { %3310 = vmatpush3.bf16.msra.mxu0 %v3881_v22 }
 0x7aa   :  { %3311 = vmatprep.subr.bf16.mxu0 %v3882_v3 }
 0x7ad   :  { %3312 = vmatpush3.bf16.msra.mxu0 %v3882_v3  ;;  %v3894_v3 = vld [vmem:[#allocation7 + $0x88] sm:$0xff]  }
 0x7ae   :  { %3313 = vmatprep.subr.bf16.mxu0 %v3883_v56 }
 0x7b1   :  { %3314 = vmatpush3.bf16.msra.mxu0 %v3883_v56  ;;  %v2287_v56 = vpack.c.bf16 %v4735_v51, %v4681_v47 }
 0x7b2   :  { %3315 = vmatprep.subr.bf16.mxu0 %v3884_v9 }
 0x7b5   :  { %3316 = vmatpush3.bf16.msra.mxu0 %v3884_v9  ;;  %v3895_v9 = vld [vmem:[#allocation7 + $0x90] sm:$0xff]  }
 0x7b6   :  { %3325 = vmatprep.subr.bf16.mxu0 %v3885_v58 }
 0x7b8   :  { %3318 = vmatmul.mubr.bf16.vlgmr.msra.gmra.mrb[28].mxu0 %v2307_v54  ;;  %v3896_v54 = vld [vmem:[#allocation7 + $0x98] sm:$0xff]  }
 0x7b9   :  { %3321 = vmatprep.mubr.bf16.mxu0 %v2308_v49  ;;  %3326 = vmatpush3.bf16.msra.mxu0 %v3885_v58 }
 0x7ba   :  { %3327 = vmatprep.subr.bf16.mxu0 %v3886_v1 }
 0x7bd   :  { %3328 = vmatpush3.bf16.msra.mxu0 %v3886_v1 }
 0x7be   :  { %3329 = vmatprep.subr.bf16.mxu0 %v3887_v25 }
 0x7c1   :  { %3330 = vmatpush3.bf16.msra.mxu0 %v3887_v25  ;;  %v2830_v25 = vld [vmem:[%s4882_s8] ss:$0 sm:$0xff]  ;;  %s4070_s8 = smov [#allocation9]  }
 0x7c2   :  { %3331 = vmatprep.subr.bf16.mxu0 %v3888_v33  ;;  %s2740_s29 = sshll.u32 %s4070_s8, 4  ;;  %s2741_s29 = int_to_ptr.vmem [resolvable:$true] %s2740_s29 }
 0x7c3   :  { %s4025_s2 = scalar_lea.vmem %s2741_s29, 384  ;;  %p4030_p3 = scmp.lt.s32.totalorder %s2741_s29, %s2741_s29 }
 0x7c4   :  { %p4026_p2 = scmp.ne.s32.totalorder %s2741_s29, %s4025_s2  ;;  %p4031_p4 = scmp.lt.s32.totalorder %s4025_s2, %s4025_s2 }
 0x7c5   :  { %3332 = vmatpush3.bf16.msra.mxu0 %v3888_v33 }
 0x7c6   :  { %3333 = vmatprep.subr.bf16.mxu0 %v3889_v23  ;;  %p4032_p5 = por %p4031_p4, %p4030_p3 }
 0x7c8   :  { %p4033_p6 = pnand %p4032_p5, %p4026_p2 }
 0x7c9   :  { %3334 = vmatpush3.bf16.msra.mxu0 %v3889_v23 }
 0x7ca   :  { %3335 = vmatprep.subr.bf16.mxu0 %v3890_v62 }
 0x7cd   :  { %3336 = vmatpush3.bf16.msra.mxu0 %v3890_v62 }
 0x7ce   :  { %3337 = vmatprep.subr.bf16.mxu0 %v3891_v6 }
 0x7d1   :  { %3338 = vmatpush3.bf16.msra.mxu0 %v3891_v6 }
 0x7d2   :  { %3339 = vmatprep.subr.bf16.mxu0 %v3892_v30 }
 0x7d5   :  { %3340 = vmatpush3.bf16.msra.mxu0 %v3892_v30 }
 0x7d6   :  { %3349 = vmatprep.subr.bf16.mxu0 %v3893_v32 }
 0x86b   :  { %v2169_v60 = vpop.f32.mrb[26].mxu0  ;;  %v2240_v39 = vpop.f32.mrb[26].mxu1 }
 0x86c   :  { %v2170_v41 = vadd.f32 %v2169_v60, %v4398_v16  ;;  %v2171_v19 = vpop.f32.mrb[27].mxu0  ;;  %v3300_v50 = vpop.f32.mrb[27].mxu1  ;;  %v2241_v16 = vadd.f32 %v2240_v39, %v4408_v46 }
 0x86d   :  { %v2172_v4 = vadd.f32 %v2171_v19, %v4400_v18  ;;  %v871_v18 = vadd.f32 %v4917_v53, %v4916_v31  ;;  %v2288_v31 = vpack.c.bf16 %v4817_v48, %v4788_v17 }
 0x86e   :  { %v2244_v29 = vadd.f32 %v2170_v41, %v291_v7 }
 0x86f   :  { %v2251_v42 = vadd.f32 %v2172_v4, %v293_v61  ;;  %v1106_v59 = vadd.f32 %v4627_v8, %v871_v18 }
 0x870   :  { %v2804_v34 = vmul.f32 -1.442695, %v2244_v29 }
 0x871   :  { %v2805_v11 = vmul.f32 -1.442695, %v2251_v42  ;;  %v1341_v12 = vadd.f32 %v4681_v47, %v1106_v59  ;;  %v3899_v47 = vld [vmem:[#allocation7 + $0xb0] sm:$0xff]  }
 0x872   :  { %3971 = vpow2.f32 %v2804_v34 }
 0x873   :  { %3973 = vpow2.f32 %v2805_v11  ;;  %v1576_v46 = vadd.f32 %v4735_v51, %v1341_v12  ;;  %v3900_v51 = vld [vmem:[#allocation7 + $0xb8] sm:$0xff]  }
 0x875   :  { %v1811_v28 = vadd.f32 %v4788_v17, %v1576_v46 }
 0x877   :  { %v2046_v38 = vadd.f32 %v4817_v48, %v1811_v28 }
 0x87c   :  { %v3972_v5 = vpop.eup %3971 }
 0x87d   :  { %v2248_v37 = vadd.f32 1.0, %v3972_v5  ;;  %v3974_v13 = vpop.eup %3973 }
 0x87e   :  { %v2255_v10 = vadd.f32 1.0, %v3974_v13 }
 0x87f   :  { %3975 = vrcp.f32 %v2248_v37 }
 0x880   :  { %3977 = vrcp.f32 %v2255_v10 }
 0x889   :  { %v3976_v26 = vpop.eup %3975 }
 0x88a   :  { %v2258_v2 = vmul.f32 %v3976_v26, %v2241_v16  ;;  %v3978_v27 = vpop.eup %3977 }
 0x88b   :  { %v2261_v55 = vsub.f32 1.0, %v3978_v27  ;;  %v2263_v0 = vmul.f32 %v3978_v27, %v4822_v36  ;;  %v2286_v36 = vpack.c.bf16 %v4627_v8, %v4917_v53  ;;  %v3897_v8 = vld [vmem:[#allocation7 + $0xa0] sm:$0xff]   ;;  %v3898_v53 = vld [vmem:[#allocation7 + $0xa8] sm:$0xff]  }
 0x88c   :  { %v2259_v14 = vadd.f32 %v2258_v2, %v4920_v24 }
 0x88e   :  { %3979 = vtanh.f32 %v2259_v14 }
 0x898   :  { %v3980_v20 = vpop.eup %3979 }
 0x899   :  { %v2262_v40 = vmul.f32 %v3980_v20, %v2261_v55 }
 0x89b   :  { %v2264_v15 = vadd.f32 %v2263_v0, %v2262_v40 }
 0x89d   :  { %v2270_v63 = vmul.f32 %v4921_v21, %v2264_v15 }
 0x89f   :  { %v2309_v35 = vpack.c.bf16 %v2270_v63, %v4817_v48  ;;  %v2273_v43 = vadd.f32 %v2270_v63, %v2046_v38  ;;  %v2564_v17 = vpack.c.bf16 %v4907_v44, %v2270_v63 }
 0x8a1   :  { %3322 = vmatmul.mubr.bf16.gmra.mrb[32].mxu0 %v2309_v35  ;;  %v2274_v22 = vmul.f32 0.125, %v2273_v43 }
 0x8a2   :  { %3341 = vmatprep.mubr.bf16.mxu0 %v2285_v57 }
 0x8a3   :  { %2275 = vst [vmem:[#allocation9 + $0x8] sm:$0xff] %v2274_v22 }
 0x8a9   :  { %3342 = vmatmul.mubr.bf16.vlgmr.msra.gmra.mrb[28].mxu0 %v2286_v36 }
 0x8aa   :  { %3350 = vmatpush3.bf16.msra.mxu0 %v3893_v32  ;;  %3345 = vmatprep.mubr.bf16.mxu0 %v2287_v56 }
 0x8ab   :  { %3351 = vmatprep.subr.bf16.mxu0 %v3894_v3 }
 0x8ae   :  { %3352 = vmatpush3.bf16.msra.mxu0 %v3894_v3 }
 0x8af   :  { %3353 = vmatprep.subr.bf16.mxu0 %v3895_v9 }
 0x8b1   :  { %3346 = vmatmul.mubr.bf16.gmra.mrb[32].mxu0 %v2288_v31 }
 0x8b2   :  { %3354 = vmatpush3.bf16.msra.mxu0 %v3895_v9  ;;  %3365 = vmatprep.mubr.bf16.mxu0 %v2286_v36 }
 0x8b3   :  { %3355 = vmatprep.subr.bf16.mxu0 %v3896_v54 }
 0x8b6   :  { %3356 = vmatpush3.bf16.msra.mxu0 %v3896_v54 }
 0x8b7   :  { %3357 = vmatprep.subr.bf16.mxu0 %v3897_v8 }
 0x8ba   :  { %3358 = vmatpush3.bf16.msra.mxu0 %v3897_v8 }
 0x8bb   :  { %3359 = vmatprep.subr.bf16.mxu0 %v3898_v53 }
 0x8be   :  { %3360 = vmatpush3.bf16.msra.mxu0 %v3898_v53 }
 0x8bf   :  { %3361 = vmatprep.subr.bf16.mxu0 %v3899_v47 }
 0x8c2   :  { %3362 = vmatpush3.bf16.msra.mxu0 %v3899_v47 }
 0x8c3   :  { %3363 = vmatprep.subr.bf16.mxu0 %v3900_v51 }
 0x8c6   :  { %3364 = vmatpush3.bf16.msra.mxu0 %v3900_v51 }
 0x8c9   :  { %3366 = vmatmul.mubr.bf16.vlgmr.msra.gmra.mrb[28].mxu0 %v2287_v56 }
 0x8ca   :  { %3369 = vmatprep.mubr.bf16.mxu0 %v2288_v31 }
 0x8d1   :  { %3370 = vmatmul.mubr.bf16.gmra.mrb[32].mxu0 %v2564_v17 }
 0x99c   :  { %v3367_v48 = vpop.f32.mrb[28].mxu0 }
 0x99d   :  { %v2664_v49 = vpop.f32.mrb[29].mxu0  ;;  %v2711_v33 = vadd.f32 %v3367_v48, %v2830_v25 }
 0x99e   :  { %v3368_v58 = vpop.f32.mrb[30].mxu0  ;;  %v2709_v23 = vadd.f32 %v2830_v25, %v2664_v49 }
 0x99f   :  { %v2667_v1 = vpop.f32.mrb[31].mxu0  ;;  %v2712_v6 = vadd.f32 %v3368_v58, %v2830_v25  ;;  %v2719_v7 = vmax.f32 %v2711_v33, 0.0 }
 0x9a0   :  { %v2710_v60 = vadd.f32 %v2830_v25, %v2667_v1  ;;  %v2717_v50 = vmax.f32 %v2709_v23, 0.0 }
 0x9a1   :  { %v2720_v4 = vmax.f32 %v2712_v6, 0.0 }
 0x9a2   :  { %v2718_v34 = vmax.f32 %v2710_v60, 0.0 }
 0x9a4   :  { %v3371_v62 = vpop.f32.mrb[32].mxu0 }
 0x9a5   :  { %v2715_v30 = vadd.f32 %v3371_v62, %v2830_v25  ;;  %v2680_v32 = vpop.f32.mrb[33].mxu0 }
 0x9a6   :  { %v2713_v39 = vadd.f32 %v2830_v25, %v2680_v32  ;;  %v3372_v45 = vpop.f32.mrb[34].mxu0 }
 0x9a7   :  { %v2723_v44 = vmax.f32 %v2715_v30, 0.0  ;;  %v2716_v41 = vadd.f32 %v3372_v45, %v2830_v25  ;;  %v2683_v19 = vpop.f32.mrb[35].mxu0 }
 0x9a8   :  { %v2721_v52 = vmax.f32 %v2713_v39, 0.0  ;;  %v2714_v61 = vadd.f32 %v2830_v25, %v2683_v19 }
 0x9a9   :  { %v2727_v29 = vmax.f32 %v2719_v7, %v2723_v44  ;;  %v2724_v42 = vmax.f32 %v2716_v41, 0.0 }
 0x9aa   :  { %v2725_v11 = vmax.f32 %v2717_v50, %v2721_v52  ;;  %v2722_v5 = vmax.f32 %v2714_v61, 0.0 }
 0x9ab   :  { %v2728_v37 = vmax.f32 %v2720_v4, %v2724_v42 }
 0x9ac   :  { %v2726_v13 = vmax.f32 %v2718_v34, %v2722_v5 }
 0x9ad   :  { %v2730_v10 = vmax.f32 %v2727_v29, %v2728_v37 }
 0x9ae   :  { %v2729_v16 = vmax.f32 %v2725_v11, %v2726_v13 }
 0x9b0   :  { %v2731_v26 = vmax.f32 %v2729_v16, %v2730_v10 }
 0x9b2   :  { %v2732_v2 = vmax.f32 %v2731_v26, 0.0 }
 0x9b4   :  { %2733 = vst [vmem:[#allocation9 + $0x10] sm:$0xff] %v2732_v2 }
 0x9b5   :  { %4036 = shalt.err (!%p4033_p6)
}
 0x9b6   :  { %s4037_s12 = scalar_lea.hbm %s4883_s9, 384 }
 0x9b7   :  { %p4038_p7 = scmp.ne.s32.totalorder %s4883_s9, %s4037_s12  ;;  %p4041_p8 = scmp.lt.u32.totalorder %s4037_s12, %s4883_s9 }
 0x9b9   :  { %p4043_p9 = pnand %p4041_p8, %p4038_p7 }
 0x9bb   :  { %4046 = shalt.err (!%p4043_p9)
}
 0x9bc   :  { %2743 = dma.vmem_to_hbm [thread:$0]  %s2741_s29, 384, %s4883_s9, [#allocation6]  }
 0x9bd   :  { %4051 = dma.done.wait [#allocation6], 384  }
 0x9be   :  { %4052 = vsyncadd [#allocation6], 4294966912 }
 0x9bf   :  { %2747 = vsyncpa [#allocation5], 1 }
 0x9c0   :  { %2748 = vsyncpa [#allocation8], 1 }
 0x9c1   :  { %2749 = vsyncpa [#allocation6], 1 }

</bundles_post_ra>
